<compile_context>
chip_gen: v6e
topology: v6e:2x2x1
jax: 0.10.0
libtpu: 0.0.40
codegen_flags: <defaults>
</compile_context>

<pallas_src>
import functools

import numpy as np
import jax
import jax.numpy as jnp
from jax.experimental import pallas as pl
from jax.experimental.pallas import tpu as pltpu


def _leaky_relu(x):
    # PyTorch nn.LeakyReLU default negative_slope = 0.01
    return jnp.where(x > 0, x, 0.01 * x)


def _round_up(v, m):
    return ((v + m - 1) // m) * m


def _pick_tile(batch):
    """Lane tile for the batch axis: 128..1024 wide, >=2 parallel grid steps."""
    b128 = _round_up(max(batch, 1), 128)
    tb = max(128, min(1024, ((b128 // 2) // 128) * 128))
    b_pad = _round_up(max(b128, 2 * tb), tb)
    return tb, b_pad


def attention_critic_kernel(
    x_ref, wenc_ref, benc_ref, wpair_ref, ered_ref, wexp_ref,
    w1a_ref, b1_ref, w2_ref, b2_ref,
    allq_ref, reg_ref,
    *, num_agent, hidden, head_dim, lp, out_pad,
):
    N, H = num_agent, hidden
    NP = N * (N - 1)                       # number of (agent, other) ordered pairs
    inv_sqrt_d = 1.0 / float(head_dim) ** 0.5

    # ---- encoders: all agents, sa+s encoders in ONE block-diagonal matmul ----
    emb = jnp.dot(wenc_ref[...], x_ref[...], preferred_element_type=jnp.float32)
    emb = _leaky_relu(emb + benc_ref[...])                          # (N*2H, TB)

    # ---- one matmul: q per pair | k per pair | v per pair | w1_s @ s_emb ----
    big = jnp.dot(wpair_ref[...], emb.astype(jnp.bfloat16),
                  preferred_element_type=jnp.float32)               # (3*NP*H + N*H, TB)
    qr = big[:NP * H]
    kg = big[NP * H:2 * NP * H]
    vg = _leaky_relu(big[2 * NP * H:3 * NP * H])
    s_crit = big[3 * NP * H:]

    # ---- per-head attention logits for every pair (block-diag ones matmul) ----
    logits = jnp.dot(ered_ref[...], qr * kg,
                     preferred_element_type=jnp.float32)            # (NP*lp, TB)

    # regularizer partials: per batch element, sum over heads & other agents of logit^2
    sq = logits * logits
    sqs = sq[:N * lp]
    for t in range(1, N - 1):
        sqs = sqs + sq[t * N * lp:(t + 1) * N * lp]
    reg_ref[...] = jnp.concatenate(
        [jnp.sum(sqs[i * lp:(i + 1) * lp], axis=0, keepdims=True) for i in range(N)],
        axis=0)                                                     # (N, TB), lane-dense

    # ---- softmax over the other agents, vectorised over agents/heads (batch in lanes)
    scaled = logits * inv_sqrt_d
    halves = [scaled[t * N * lp:(t + 1) * N * lp] for t in range(N - 1)]
    m = halves[0]
    for h in halves[1:]:
        m = jnp.maximum(m, h)
    exps = [jnp.exp(h - m) for h in halves]
    den = exps[0]
    for e in exps[1:]:
        den = den + e
    inv_den = pl.reciprocal(den, approx=True)                       # EUP slot
    w_all = jnp.concatenate([e * inv_den for e in exps], axis=0)    # (NP*lp, TB)

    # ---- expand weights across head_dim (MXU) and accumulate weighted values ----
    wf = jnp.dot(wexp_ref[...], w_all, preferred_element_type=jnp.float32)  # (NP*H, TB)
    contrib = wf * vg
    attn = contrib[:N * H]
    for t in range(1, N - 1):
        attn = attn + contrib[t * N * H:(t + 1) * N * H]            # (N*H, TB)

    # ---- per-agent critic heads (block-diagonal weights, all agents at once) ----
    h1 = _leaky_relu(
        s_crit
        + jnp.dot(w1a_ref[...], attn.astype(jnp.bfloat16),
                  preferred_element_type=jnp.float32)
        + b1_ref[...])
    allq = jnp.dot(w2_ref[...], h1.astype(jnp.bfloat16),
                   preferred_element_type=jnp.float32) + b2_ref[...]         # (N*OP, TB)
    for i in range(N):
        allq_ref[i] = allq[i * out_pad:(i + 1) * out_pad]


def _block_place(rows, cols, blocks, dtype):
    m = jnp.zeros((rows, cols), jnp.float32)
    for r, c, blk in blocks:
        m = m.at[r:r + blk.shape[0], c:c + blk.shape[1]].set(blk.astype(jnp.float32))
    return m.astype(dtype)


@jax.jit
def attention_critic_forward(s_stack, a_stack, params):
    """s_stack: (N,B,s_dim), a_stack: (N,B,a_dim) one-hot. Returns (q, all_q, reg)."""
    N, B, s_dim = s_stack.shape
    A = a_stack.shape[-1]
    HN, _, hd = params["w_q"].shape
    H = HN * hd                          # hidden; multiple of 8 keeps all slices aligned
    out_dim = params["w2"].shape[-1]
    sa_dim = s_dim + A
    sa_p = _round_up(sa_dim, 8)
    LP = _round_up(HN, 8)                # per-pair logit rows (heads padded to a tile)
    OP = _round_up(out_dim, 8)
    NP = N * (N - 1)
    D2 = N * 2 * H
    bf16 = jnp.bfloat16

    # BatchNorm (training mode, biased var, eps=1e-5) in the wrapper; BN(sa)[:, :s]==BN(s).
    sa = jnp.concatenate([s_stack, a_stack], axis=-1)               # (N, B, sa_dim)
    mu = jnp.mean(sa, axis=1, keepdims=True)
    var = jnp.mean((sa - mu) ** 2, axis=1, keepdims=True)
    sa_n = (sa - mu) * jax.lax.rsqrt(var + 1e-5)

    tb, B_pad = _pick_tile(B)
    x = jnp.transpose(sa_n, (0, 2, 1))                              # feature-major
    x = jnp.pad(x, ((0, 0), (0, sa_p - sa_dim), (0, B_pad - B)))
    x = x.reshape(N * sa_p, B_pad).astype(bf16)

    # ---- block-structured constant weights (all W^T for feature-major matmuls) ----
    fold = lambda w: jnp.transpose(w, (1, 0, 2)).reshape(H, H)      # (in H, out H head-major)
    wqT, wkT, wvT = fold(params["w_q"]).T, fold(params["w_k"]).T, fold(params["w_v"]).T

    enc_blocks, b_enc_parts = [], []
    for i in range(N):
        enc_blocks.append((i * 2 * H,     i * sa_p, params["w_sa"][i].T))   # sa encoder
        enc_blocks.append((i * 2 * H + H, i * sa_p, params["w_s"][i].T))    # s  encoder
        b_enc_parts.append(params["b_sa"][i].reshape(H, 1))
        b_enc_parts.append(params["b_s"][i].reshape(H, 1))
    w_enc = _block_place(D2, N * sa_p, enc_blocks, bf16)
    b_enc = jnp.concatenate(b_enc_parts, axis=0)

    # pair order p = jj*N + i with j = [others of i][jj]  (so attn over j is a 2-block add)
    pairs = [(i, [j for j in range(N) if j != i][jj])
             for jj in range(N - 1) for i in range(N)]
    R = 3 * NP * H + N * H
    pb = []
    for p, (i, j) in enumerate(pairs):
        pb.append((p * H,              i * 2 * H + H, wqT))         # q_i from s_emb_i
        pb.append((NP * H + p * H,     j * 2 * H,     wkT))         # k_j from sa_emb_j
        pb.append((2 * NP * H + p * H, j * 2 * H,     wvT))         # v_j from sa_emb_j
    for i in range(N):
        pb.append((3 * NP * H + i * H, i * 2 * H + H, params["w1"][i, :H, :].T))
    w_pair = _block_place(R, D2, pb, bf16)

    # head-dim reduce / expand block-diagonal ones matrices (static -> numpy constants)
    ered = np.zeros((NP * LP, NP * H), np.float32)
    wexp = np.zeros((NP * H, NP * LP), np.float32)
    for p in range(NP):
        for h in range(HN):
            ered[p * LP + h, p * H + h * hd:p * H + (h + 1) * hd] = 1.0
            wexp[p * H + h * hd:p * H + (h + 1) * hd, p * LP + h] = 1.0
    ered = jnp.asarray(ered)
    wexp = jnp.asarray(wexp)

    w1a = _block_place(N * H, N * H,
                       [(i * H, i * H, params["w1"][i, H:, :].T) for i in range(N)], bf16)
    b1 = jnp.concatenate([params["b1"][i].reshape(H, 1) for i in range(N)], axis=0)
    w2 = _block_place(N * OP, N * H,
                      [(i * OP, i * H, params["w2"][i].T) for i in range(N)], bf16)
    b2 = jnp.concatenate(
        [jnp.pad(params["b2"][i].reshape(out_dim, 1), ((0, OP - out_dim), (0, 0)))
         for i in range(N)], axis=0)

    grid = (B_pad // tb,)

    def full(shape):
        n = len(shape)
        return pl.BlockSpec(shape, lambda b: (0,) * n)

    kernel = functools.partial(attention_critic_kernel, num_agent=N, hidden=H,
                               head_dim=hd, lp=LP, out_pad=OP)

    allq_fm, reg_rows = pl.pallas_call(
        kernel,
        grid=grid,
        out_shape=(jax.ShapeDtypeStruct((N, OP, B_pad), jnp.float32),
                   jax.ShapeDtypeStruct((N, B_pad), jnp.float32)),
        in_specs=[
            pl.BlockSpec((N * sa_p, tb), lambda b: (0, b)),   # streamed, BN'd, bf16
            full((D2, N * sa_p)),                             # w_enc (block-diag)
            full((D2, 1)),                                    # b_enc
            full((R, D2)),                                    # w_pair (q|k|v|w1s)
            full((NP * LP, NP * H)),                          # e_reduce (ones)
            full((NP * H, NP * LP)),                          # e_expand (ones)
            full((N * H, N * H)),                             # w1_attn (block-diag)
            full((N * H, 1)),                                 # b1
            full((N * OP, N * H)),                            # w2 (block-diag)
            full((N * OP, 1)),                                # b2
        ],
        out_specs=(
            pl.BlockSpec((N, OP, tb), lambda b: (0, 0, b)),   # all_q, lane-dense
            pl.BlockSpec((N, tb), lambda b: (0, b)),          # reg partials, lane-dense
        ),
        compiler_params=pltpu.CompilerParams(
            dimension_semantics=("parallel",),                # megacore on v7x
            vmem_limit_bytes=32 * 1024 * 1024,
        ),
    )(x, w_enc, b_enc, w_pair, ered, wexp, w1a, b1, w2, b2)

    all_q = jnp.transpose(allq_fm, (0, 2, 1))[:, :B, :out_dim]      # (N, B, out_dim)
    reg = jnp.sum(reg_rows[:, :B], axis=1) / (B * (N - 1))

    # actions = argmax of the (one-hot) action input, gather Q (cheap XLA gather outside)
    actions = jnp.argmax(a_stack, axis=-1)                          # (N, B)
    q = jnp.take_along_axis(all_q, actions[..., None], axis=-1)     # (N, B, 1)
    return q, all_q, reg


def init_params(key, num_agent, s_dim, a_dim, head_dim, head_num, out_dim):
    H = head_dim * head_num
    sa_dim = s_dim + a_dim
    ks = jax.random.split(key, 12)

    def lin(k, shape, fan_in):
        bound = 1.0 / float(fan_in) ** 0.5
        return jax.random.uniform(k, shape, jnp.float32, -bound, bound)

    return dict(
        w_s=lin(ks[0], (num_agent, s_dim, H), s_dim),
        b_s=lin(ks[1], (num_agent, 1, H), s_dim),
        w_sa=lin(ks[2], (num_agent, sa_dim, H), sa_dim),
        b_sa=lin(ks[3], (num_agent, 1, H), sa_dim),
        w_q=lin(ks[4], (head_num, H, head_dim), H),
        w_k=lin(ks[5], (head_num, H, head_dim), H),
        w_v=lin(ks[6], (head_num, H, head_dim), H),
        w1=lin(ks[7], (num_agent, 2 * H, H), 2 * H),
        b1=lin(ks[8], (num_agent, 1, H), 2 * H),
        w2=lin(ks[9], (num_agent, H, out_dim), H),
        b2=lin(ks[10], (num_agent, 1, out_dim), H),
    )


if __name__ == "__main__":
    num_agent, batch = 3, 8
    s_dim, a_dim = 16, 8
    head_dim, head_num = 8, 4
    out_dim = a_dim            # Q value per discrete action

    key = jax.random.PRNGKey(0)
    k_p, k_s, k_a = jax.random.split(key, 3)
    params = init_params(k_p, num_agent, s_dim, a_dim, head_dim, head_num, out_dim)

    s_stack = jax.random.normal(k_s, (num_agent, batch, s_dim), jnp.float32)
    a_logits = jax.random.normal(k_a, (num_agent, batch, a_dim), jnp.float32)
    a_stack = jax.nn.one_hot(jnp.argmax(a_logits, axis=-1), a_dim, dtype=jnp.float32)

    q, all_q, reg = attention_critic_forward(s_stack, a_stack, params)
    jax.block_until_ready((q, all_q, reg))

    assert q.shape == (num_agent, batch, 1)
    assert all_q.shape == (num_agent, batch, out_dim)
    assert reg.shape == (num_agent,)
    assert bool(jnp.all(jnp.isfinite(q)))
    assert bool(jnp.all(jnp.isfinite(all_q)))
    assert bool(jnp.all(jnp.isfinite(reg)))
    print("KERNEL_OK")
</pallas_src>

<mosaic_0001>
module attributes {stable_mosaic.version = 11 : i64} {
  func.func @attention_critic_kernel(%arg0: i32, %arg1: memref<72x128xbf16, #tpu.memory_space<vmem>>, %arg2: memref<192x72xbf16, #tpu.memory_space<vmem>>, %arg3: memref<192x1xf32, #tpu.memory_space<vmem>>, %arg4: memref<672x192xbf16, #tpu.memory_space<vmem>>, %arg5: memref<48x192xf32, #tpu.memory_space<vmem>>, %arg6: memref<192x48xf32, #tpu.memory_space<vmem>>, %arg7: memref<96x96xbf16, #tpu.memory_space<vmem>>, %arg8: memref<96x1xf32, #tpu.memory_space<vmem>>, %arg9: memref<24x96xbf16, #tpu.memory_space<vmem>>, %arg10: memref<24x1xf32, #tpu.memory_space<vmem>>, %arg11: memref<3x8x128xf32, #tpu.memory_space<vmem>>, %arg12: memref<3x128xf32, #tpu.memory_space<vmem>>) attributes {dimension_semantics = [#tpu.dimension_semantics<parallel>], iteration_bounds = array<i64: 2>, scalar_prefetch = 0 : i64, scratch_operands = 0 : i64, tpu.core_type = #tpu.core_type<tc>, window_params = [{transform_indices = @transform_0, window_bounds = array<i64: 72, 128>}, {pipeline_mode = #tpu.pipeline_mode<synchronous>, transform_indices = @transform_1, window_bounds = array<i64: 192, 72>}, {pipeline_mode = #tpu.pipeline_mode<synchronous>, transform_indices = @transform_2, window_bounds = array<i64: 192, 1>}, {pipeline_mode = #tpu.pipeline_mode<synchronous>, transform_indices = @transform_3, window_bounds = array<i64: 672, 192>}, {pipeline_mode = #tpu.pipeline_mode<synchronous>, transform_indices = @transform_4, window_bounds = array<i64: 48, 192>}, {pipeline_mode = #tpu.pipeline_mode<synchronous>, transform_indices = @transform_5, window_bounds = array<i64: 192, 48>}, {pipeline_mode = #tpu.pipeline_mode<synchronous>, transform_indices = @transform_6, window_bounds = array<i64: 96, 96>}, {pipeline_mode = #tpu.pipeline_mode<synchronous>, transform_indices = @transform_7, window_bounds = array<i64: 96, 1>}, {pipeline_mode = #tpu.pipeline_mode<synchronous>, transform_indices = @transform_8, window_bounds = array<i64: 24, 96>}, {pipeline_mode = #tpu.pipeline_mode<synchronous>, transform_indices = @transform_9, window_bounds = array<i64: 24, 1>}, {transform_indices = @transform_10, window_bounds = array<i64: 3, 8, 128>}, {transform_indices = @transform_11, window_bounds = array<i64: 3, 128>}]} {
    %c0 = arith.constant 0 : index
    %c0_0 = arith.constant 0 : index
    %0 = vector.load %arg2[%c0, %c0_0] : memref<192x72xbf16, #tpu.memory_space<vmem>>, vector<192x72xbf16>
    %c0_1 = arith.constant 0 : index
    %c0_2 = arith.constant 0 : index
    %1 = vector.load %arg1[%c0_1, %c0_2] : memref<72x128xbf16, #tpu.memory_space<vmem>>, vector<72x128xbf16>
    %cst = arith.constant dense<0.000000e+00> : vector<192x128xf32>
    %2 = tpu.matmul %0, %1, %cst {dimension_numbers = #tpu.dot_dimension_numbers<[1], [0], [0], [1], [0, 0, 1, 1], [], []>} : vector<192x72xbf16>, vector<72x128xbf16>, vector<192x128xf32> -> vector<192x128xf32>
    %c0_3 = arith.constant 0 : index
    %c0_4 = arith.constant 0 : index
    %3 = vector.load %arg3[%c0_3, %c0_4] : memref<192x1xf32, #tpu.memory_space<vmem>>, vector<192x1xf32>
    %4 = vector.broadcast %3 : vector<192x1xf32> to vector<192x128xf32>
    %5 = arith.addf %2, %4 : vector<192x128xf32>
    %cst_5 = arith.constant 0.000000e+00 : f32
    %6 = vector.broadcast %cst_5 : f32 to vector<192x128xf32>
    %7 = arith.cmpf ogt, %5, %6 : vector<192x128xf32>
    %cst_6 = arith.constant 0.00999999977 : f32
    %8 = vector.broadcast %cst_6 : f32 to vector<192x128xf32>
    %9 = arith.mulf %8, %5 : vector<192x128xf32>
    %10 = arith.select %7, %5, %9 : vector<192x128xi1>, vector<192x128xf32>
    %c0_7 = arith.constant 0 : index
    %c0_8 = arith.constant 0 : index
    %11 = vector.load %arg4[%c0_7, %c0_8] : memref<672x192xbf16, #tpu.memory_space<vmem>>, vector<672x192xbf16>
    %12 = arith.truncf %10 : vector<192x128xf32> to vector<192x128xbf16>
    %cst_9 = arith.constant dense<0.000000e+00> : vector<672x128xf32>
    %13 = tpu.matmul %11, %12, %cst_9 {dimension_numbers = #tpu.dot_dimension_numbers<[1], [0], [0], [1], [0, 0, 1, 1], [], []>} : vector<672x192xbf16>, vector<192x128xbf16>, vector<672x128xf32> -> vector<672x128xf32>
    %14 = vector.extract_strided_slice %13 {offsets = [0, 0], sizes = [192, 128], strides = [1, 1]} : vector<672x128xf32> to vector<192x128xf32>
    %15 = vector.extract_strided_slice %13 {offsets = [192, 0], sizes = [192, 128], strides = [1, 1]} : vector<672x128xf32> to vector<192x128xf32>
    %16 = vector.extract_strided_slice %13 {offsets = [384, 0], sizes = [192, 128], strides = [1, 1]} : vector<672x128xf32> to vector<192x128xf32>
    %cst_10 = arith.constant 0.000000e+00 : f32
    %17 = vector.broadcast %cst_10 : f32 to vector<192x128xf32>
    %18 = arith.cmpf ogt, %16, %17 : vector<192x128xf32>
    %cst_11 = arith.constant 0.00999999977 : f32
    %19 = vector.broadcast %cst_11 : f32 to vector<192x128xf32>
    %20 = arith.mulf %19, %16 : vector<192x128xf32>
    %21 = arith.select %18, %16, %20 : vector<192x128xi1>, vector<192x128xf32>
    %22 = vector.extract_strided_slice %13 {offsets = [576, 0], sizes = [96, 128], strides = [1, 1]} : vector<672x128xf32> to vector<96x128xf32>
    %c0_12 = arith.constant 0 : index
    %c0_13 = arith.constant 0 : index
    %23 = vector.load %arg5[%c0_12, %c0_13] : memref<48x192xf32, #tpu.memory_space<vmem>>, vector<48x192xf32>
    %24 = arith.mulf %14, %15 : vector<192x128xf32>
    %cst_14 = arith.constant dense<0.000000e+00> : vector<48x128xf32>
    %25 = tpu.matmul %23, %24, %cst_14 {dimension_numbers = #tpu.dot_dimension_numbers<[1], [0], [0], [1], [0, 0, 1, 1], [], []>} : vector<48x192xf32>, vector<192x128xf32>, vector<48x128xf32> -> vector<48x128xf32>
    %26 = arith.mulf %25, %25 : vector<48x128xf32>
    %27 = vector.extract_strided_slice %26 {offsets = [0, 0], sizes = [24, 128], strides = [1, 1]} : vector<48x128xf32> to vector<24x128xf32>
    %28 = vector.extract_strided_slice %26 {offsets = [24, 0], sizes = [24, 128], strides = [1, 1]} : vector<48x128xf32> to vector<24x128xf32>
    %29 = arith.addf %27, %28 : vector<24x128xf32>
    %30 = vector.extract_strided_slice %29 {offsets = [0, 0], sizes = [8, 128], strides = [1, 1]} : vector<24x128xf32> to vector<8x128xf32>
    %cst_15 = arith.constant dense<0.000000e+00> : vector<128xf32>
    %31 = vector.multi_reduction <add>, %30, %cst_15 [0] : vector<8x128xf32> to vector<128xf32>
    %32 = vector.shape_cast %31 : vector<128xf32> to vector<1x128xf32>
    %33 = vector.extract_strided_slice %29 {offsets = [8, 0], sizes = [8, 128], strides = [1, 1]} : vector<24x128xf32> to vector<8x128xf32>
    %cst_16 = arith.constant dense<0.000000e+00> : vector<128xf32>
    %34 = vector.multi_reduction <add>, %33, %cst_16 [0] : vector<8x128xf32> to vector<128xf32>
    %35 = vector.shape_cast %34 : vector<128xf32> to vector<1x128xf32>
    %36 = vector.extract_strided_slice %29 {offsets = [16, 0], sizes = [8, 128], strides = [1, 1]} : vector<24x128xf32> to vector<8x128xf32>
    %cst_17 = arith.constant dense<0.000000e+00> : vector<128xf32>
    %37 = vector.multi_reduction <add>, %36, %cst_17 [0] : vector<8x128xf32> to vector<128xf32>
    %38 = vector.shape_cast %37 : vector<128xf32> to vector<1x128xf32>
    %39 = tpu.concatenate %32, %35, %38 in 0 : vector<1x128xf32>, vector<1x128xf32>, vector<1x128xf32> -> vector<3x128xf32>
    %c0_18 = arith.constant 0 : index
    %c0_19 = arith.constant 0 : index
    %40 = vector.load %arg12[%c0_18, %c0_19] : memref<3x128xf32, #tpu.memory_space<vmem>>, vector<3x128xf32>
    tpu.vector_store %arg12[%c0_18, %c0_19], %39 {strides = array<i32>} : memref<3x128xf32, #tpu.memory_space<vmem>>, vector<3x128xf32>,
    %cst_20 = arith.constant 0.353553385 : f32
    %41 = vector.broadcast %cst_20 : f32 to vector<48x128xf32>
    %42 = arith.mulf %25, %41 : vector<48x128xf32>
    %43 = vector.extract_strided_slice %42 {offsets = [0, 0], sizes = [24, 128], strides = [1, 1]} : vector<48x128xf32> to vector<24x128xf32>
    %44 = vector.extract_strided_slice %42 {offsets = [24, 0], sizes = [24, 128], strides = [1, 1]} : vector<48x128xf32> to vector<24x128xf32>
    %45 = arith.maximumf %43, %44 : vector<24x128xf32>
    %46 = arith.subf %43, %45 : vector<24x128xf32>
    %47 = math.exp %46 : vector<24x128xf32>
    %48 = arith.subf %44, %45 : vector<24x128xf32>
    %49 = math.exp %48 : vector<24x128xf32>
    %50 = arith.addf %47, %49 : vector<24x128xf32>
    %51 = tpu.reciprocal %50 {approx = true} : vector<24x128xf32> -> vector<24x128xf32>
    %52 = arith.mulf %47, %51 : vector<24x128xf32>
    %53 = arith.mulf %49, %51 : vector<24x128xf32>
    %54 = tpu.concatenate %52, %53 in 0 : vector<24x128xf32>, vector<24x128xf32> -> vector<48x128xf32>
    %c0_21 = arith.constant 0 : index
    %c0_22 = arith.constant 0 : index
    %55 = vector.load %arg6[%c0_21, %c0_22] : memref<192x48xf32, #tpu.memory_space<vmem>>, vector<192x48xf32>
    %cst_23 = arith.constant dense<0.000000e+00> : vector<192x128xf32>
    %56 = tpu.matmul %55, %54, %cst_23 {dimension_numbers = #tpu.dot_dimension_numbers<[1], [0], [0], [1], [0, 0, 1, 1], [], []>} : vector<192x48xf32>, vector<48x128xf32>, vector<192x128xf32> -> vector<192x128xf32>
    %57 = arith.mulf %56, %21 : vector<192x128xf32>
    %58 = vector.extract_strided_slice %57 {offsets = [0, 0], sizes = [96, 128], strides = [1, 1]} : vector<192x128xf32> to vector<96x128xf32>
    %59 = vector.extract_strided_slice %57 {offsets = [96, 0], sizes = [96, 128], strides = [1, 1]} : vector<192x128xf32> to vector<96x128xf32>
    %60 = arith.addf %58, %59 : vector<96x128xf32>
    %c0_24 = arith.constant 0 : index
    %c0_25 = arith.constant 0 : index
    %61 = vector.load %arg7[%c0_24, %c0_25] : memref<96x96xbf16, #tpu.memory_space<vmem>>, vector<96x96xbf16>
    %62 = arith.truncf %60 : vector<96x128xf32> to vector<96x128xbf16>
    %cst_26 = arith.constant dense<0.000000e+00> : vector<96x128xf32>
    %63 = tpu.matmul %61, %62, %cst_26 {dimension_numbers = #tpu.dot_dimension_numbers<[1], [0], [0], [1], [0, 0, 1, 1], [], []>} : vector<96x96xbf16>, vector<96x128xbf16>, vector<96x128xf32> -> vector<96x128xf32>
    %64 = arith.addf %22, %63 : vector<96x128xf32>
    %c0_27 = arith.constant 0 : index
    %c0_28 = arith.constant 0 : index
    %65 = vector.load %arg8[%c0_27, %c0_28] : memref<96x1xf32, #tpu.memory_space<vmem>>, vector<96x1xf32>
    %66 = vector.broadcast %65 : vector<96x1xf32> to vector<96x128xf32>
    %67 = arith.addf %64, %66 : vector<96x128xf32>
    %cst_29 = arith.constant 0.000000e+00 : f32
    %68 = vector.broadcast %cst_29 : f32 to vector<96x128xf32>
    %69 = arith.cmpf ogt, %67, %68 : vector<96x128xf32>
    %cst_30 = arith.constant 0.00999999977 : f32
    %70 = vector.broadcast %cst_30 : f32 to vector<96x128xf32>
    %71 = arith.mulf %70, %67 : vector<96x128xf32>
    %72 = arith.select %69, %67, %71 : vector<96x128xi1>, vector<96x128xf32>
    %c0_31 = arith.constant 0 : index
    %c0_32 = arith.constant 0 : index
    %73 = vector.load %arg9[%c0_31, %c0_32] : memref<24x96xbf16, #tpu.memory_space<vmem>>, vector<24x96xbf16>
    %74 = arith.truncf %72 : vector<96x128xf32> to vector<96x128xbf16>
    %cst_33 = arith.constant dense<0.000000e+00> : vector<24x128xf32>
    %75 = tpu.matmul %73, %74, %cst_33 {dimension_numbers = #tpu.dot_dimension_numbers<[1], [0], [0], [1], [0, 0, 1, 1], [], []>} : vector<24x96xbf16>, vector<96x128xbf16>, vector<24x128xf32> -> vector<24x128xf32>
    %c0_34 = arith.constant 0 : index
    %c0_35 = arith.constant 0 : index
    %76 = vector.load %arg10[%c0_34, %c0_35] : memref<24x1xf32, #tpu.memory_space<vmem>>, vector<24x1xf32>
    %77 = vector.broadcast %76 : vector<24x1xf32> to vector<24x128xf32>
    %78 = arith.addf %75, %77 : vector<24x128xf32>
    %79 = vector.extract_strided_slice %78 {offsets = [0, 0], sizes = [8, 128], strides = [1, 1]} : vector<24x128xf32> to vector<8x128xf32>
    %c0_36 = arith.constant 0 : index
    %c0_37 = arith.constant 0 : index
    %c0_38 = arith.constant 0 : index
    %80 = vector.load %arg11[%c0_36, %c0_37, %c0_38] : memref<3x8x128xf32, #tpu.memory_space<vmem>>, vector<1x8x128xf32>
    %81 = vector.shape_cast %80 : vector<1x8x128xf32> to vector<8x128xf32>
    %82 = vector.shape_cast %79 : vector<8x128xf32> to vector<1x8x128xf32>
    tpu.vector_store %arg11[%c0_36, %c0_37, %c0_38], %82 {strides = array<i32>} : memref<3x8x128xf32, #tpu.memory_space<vmem>>, vector<1x8x128xf32>,
    %83 = vector.extract_strided_slice %78 {offsets = [8, 0], sizes = [8, 128], strides = [1, 1]} : vector<24x128xf32> to vector<8x128xf32>
    %c1 = arith.constant 1 : index
    %c0_39 = arith.constant 0 : index
    %c0_40 = arith.constant 0 : index
    %84 = vector.load %arg11[%c1, %c0_39, %c0_40] : memref<3x8x128xf32, #tpu.memory_space<vmem>>, vector<1x8x128xf32>
    %85 = vector.shape_cast %84 : vector<1x8x128xf32> to vector<8x128xf32>
    %86 = vector.shape_cast %83 : vector<8x128xf32> to vector<1x8x128xf32>
    tpu.vector_store %arg11[%c1, %c0_39, %c0_40], %86 {strides = array<i32>} : memref<3x8x128xf32, #tpu.memory_space<vmem>>, vector<1x8x128xf32>,
    %87 = vector.extract_strided_slice %78 {offsets = [16, 0], sizes = [8, 128], strides = [1, 1]} : vector<24x128xf32> to vector<8x128xf32>
    %c2 = arith.constant 2 : index
    %c0_41 = arith.constant 0 : index
    %c0_42 = arith.constant 0 : index
    %88 = vector.load %arg11[%c2, %c0_41, %c0_42] : memref<3x8x128xf32, #tpu.memory_space<vmem>>, vector<1x8x128xf32>
    %89 = vector.shape_cast %88 : vector<1x8x128xf32> to vector<8x128xf32>
    %90 = vector.shape_cast %87 : vector<8x128xf32> to vector<1x8x128xf32>
    tpu.vector_store %arg11[%c2, %c0_41, %c0_42], %90 {strides = array<i32>} : memref<3x8x128xf32, #tpu.memory_space<vmem>>, vector<1x8x128xf32>,
    return
  }
  func.func @transform_0(%arg0: i32) -> (i32, i32) {
    %c0_i32 = arith.constant 0 : i32
    %c0_i32_0 = arith.constant 0 : i32
    return %c0_i32, %arg0 : i32, i32
  }
  func.func @transform_1(%arg0: i32) -> (i32, i32) {
    %c0_i32 = arith.constant 0 : i32
    %c0_i32_0 = arith.constant 0 : i32
    %c0_i32_1 = arith.constant 0 : i32
    return %c0_i32, %c0_i32_0 : i32, i32
  }
  func.func @transform_2(%arg0: i32) -> (i32, i32) {
    %c0_i32 = arith.constant 0 : i32
    %c0_i32_0 = arith.constant 0 : i32
    %c0_i32_1 = arith.constant 0 : i32
    return %c0_i32, %c0_i32_0 : i32, i32
  }
  func.func @transform_3(%arg0: i32) -> (i32, i32) {
    %c0_i32 = arith.constant 0 : i32
    %c0_i32_0 = arith.constant 0 : i32
    %c0_i32_1 = arith.constant 0 : i32
    return %c0_i32, %c0_i32_0 : i32, i32
  }
  func.func @transform_4(%arg0: i32) -> (i32, i32) {
    %c0_i32 = arith.constant 0 : i32
    %c0_i32_0 = arith.constant 0 : i32
    %c0_i32_1 = arith.constant 0 : i32
    return %c0_i32, %c0_i32_0 : i32, i32
  }
  func.func @transform_5(%arg0: i32) -> (i32, i32) {
    %c0_i32 = arith.constant 0 : i32
    %c0_i32_0 = arith.constant 0 : i32
    %c0_i32_1 = arith.constant 0 : i32
    return %c0_i32, %c0_i32_0 : i32, i32
  }
  func.func @transform_6(%arg0: i32) -> (i32, i32) {
    %c0_i32 = arith.constant 0 : i32
    %c0_i32_0 = arith.constant 0 : i32
    %c0_i32_1 = arith.constant 0 : i32
    return %c0_i32, %c0_i32_0 : i32, i32
  }
  func.func @transform_7(%arg0: i32) -> (i32, i32) {
    %c0_i32 = arith.constant 0 : i32
    %c0_i32_0 = arith.constant 0 : i32
    %c0_i32_1 = arith.constant 0 : i32
    return %c0_i32, %c0_i32_0 : i32, i32
  }
  func.func @transform_8(%arg0: i32) -> (i32, i32) {
    %c0_i32 = arith.constant 0 : i32
    %c0_i32_0 = arith.constant 0 : i32
    %c0_i32_1 = arith.constant 0 : i32
    return %c0_i32, %c0_i32_0 : i32, i32
  }
  func.func @transform_9(%arg0: i32) -> (i32, i32) {
    %c0_i32 = arith.constant 0 : i32
    %c0_i32_0 = arith.constant 0 : i32
    %c0_i32_1 = arith.constant 0 : i32
    return %c0_i32, %c0_i32_0 : i32, i32
  }
  func.func @transform_10(%arg0: i32) -> (i32, i32, i32) {
    %c0_i32 = arith.constant 0 : i32
    %c0_i32_0 = arith.constant 0 : i32
    %c0_i32_1 = arith.constant 0 : i32
    return %c0_i32, %c0_i32_0, %arg0 : i32, i32, i32
  }
  func.func @transform_11(%arg0: i32) -> (i32, i32) {
    %c0_i32 = arith.constant 0 : i32
    %c0_i32_0 = arith.constant 0 : i32
    return %c0_i32, %arg0 : i32, i32
  }
}

</mosaic_0001>

<bundles_post_ra>
// kernel: attention_critic_forward.1
= control target key start
LH: loop header
LB: loop body
LE: loop exit
PB: predicated region body
PF: predicated region fallthrough
CT: control target
= control target key end

     0   :  { %s3778_s17 = smov 0   ;;  %s3780_s18 = smov 0   ;;  %s4798_s0 = inlined_call_operand.vmem [shape: bf16[72,256], index: 0, kind: input, shape index: {}]   ;;  %s4799_s1 = inlined_call_operand.vmem [shape: bf16[192,72], index: 1, kind: input, shape index: {}]   ;;  %s4800_s2 = inlined_call_operand.vmem [shape: f32[192,1], index: 2, kind: input, shape index: {}]   ;;  %s4801_s3 = inlined_call_operand.vmem [shape: bf16[672,192], index: 3, kind: input, shape index: {}]   ;;  %s4802_s4 = inlined_call_operand.vmem [shape: f32[48,192], index: 4, kind: input, shape index: {}]   ;;  %s4803_s5 = inlined_call_operand.vmem [shape: f32[192,48], index: 5, kind: input, shape index: {}]   ;;  %s4804_s6 = inlined_call_operand.vmem [shape: bf16[96,96], index: 6, kind: input, shape index: {}]   ;;  %s4805_s7 = inlined_call_operand.vmem [shape: f32[96,1], index: 7, kind: input, shape index: {}]   ;;  %s4806_s8 = inlined_call_operand.vmem [shape: bf16[24,96], index: 8, kind: input, shape index: {}]   ;;  %s4807_s9 = inlined_call_operand.vmem [shape: f32[24,1], index: 9, kind: input, shape index: {}]   ;;  %s4808_s10 = inlined_call_operand.vmem [shape: f32[3,8,256], index: 10, kind: output, shape index: {0}]   ;;  %s4809_s11 = inlined_call_operand.vmem [shape: f32[3,256], index: 11, kind: output, shape index: {1}]  }
   0x1   :  { %s3782_s19 = smov 0  }
   0x2 LB: > { %s3794_s20 = sadd.s32 4294967295, %s3714_s19   ;;  %s3797_s21 = sadd.s32 1, %s3714_s19   ;;  %s3714_s19 = sphi %s3782_s19, %s4813_s19   ;;  %s3710_s18 = sphi %s3780_s18, %s4812_s18   ;;  %s3706_s17 = sphi %s3778_s17, %s4811_s17  }
   0x3   : > { %s26_s22 = ssub.s32 %s3714_s19, %s3797_s21  ;;  %s29_s23 = sadd.s32 1, %s3710_s18 }
   0x4   : > { %p27_p0 = scmp.eq.s32.totalorder %s26_s22, 0  ;;  %p36_p1 = scmp.ne.s32.totalorder %s3710_s18, %s3706_s17 }
   0x5   : > { %p37_p2 = scmp.eq.s32.totalorder %s3714_s19, 0  ;;  %p255_p3 = scmp.eq.s32.totalorder %s3794_s20, 1 }
   0x6   : > { %s3807_s24 = scalar_select %p27_p0, %s3710_s18, %s29_s23  }
   0x7   : > { %p38_p4 = por %p37_p2, %p36_p1  ;;  %p3809_p5 = por %p255_p3, %p36_p1 }
   0x8   : > { %p3068_p6 = scmp.ge.s32.totalorder %s3714_s19, 2 }
   0xa   : > { %330 = sbr.rel (%p3068_p6) target bundleno = 25 (0x19), region = 52 }
   0xf   : > { %333 = sbr.rel (!%p38_p4) target bundleno = 25 (0x19), region = 56  ;;  %s335_s26 = sand.u32 (%p38_p4), 1, %s3710_s18  }
  0x10   : > { %s3069_s27 = sshll.u32 (%p38_p4), %s3714_s19, 2  ;;  %s3492_s28 = smul.u32 (%p38_p4), 36, %s335_s26 }
  0x11   : > { %s339_s12 = scalar_lea.vmem (%p38_p4), %s4798_s0, %s3069_s27 }
  0x12   : > { %v356_v0 = vld [vmem:[%s339_s12] sm:$0xf] (%p38_p4)  ;;  %v358_v1 = vld [vmem:[%s339_s12 + $0x8] sm:$0xf] (%p38_p4)  ;;  %v360_v2 = vld [vmem:[%s339_s12 + $0x10] sm:$0xf] (%p38_p4) }
  0x13   : > { %v362_v3 = vld [vmem:[%s339_s12 + $0x18] sm:$0xf] (%p38_p4)  ;;  %v364_v4 = vld [vmem:[%s339_s12 + $0x20] sm:$0xf] (%p38_p4)  ;;  %s337_s13 = scalar_lea.vmem (%p38_p4), [#allocation2], %s3492_s28 }
  0x14   : > { %357 = vst [vmem:[%s337_s13] sm:$0xf] %v356_v0  ;;  %359 = vst [vmem:[%s337_s13 + $0x4] sm:$0xf] %v358_v1  ;;  %v366_v5 = vld [vmem:[%s339_s12 + $0x28] sm:$0xf] }
  0x15   : > { %361 = vst [vmem:[%s337_s13 + $0x8] sm:$0xf] %v360_v2  ;;  %363 = vst [vmem:[%s337_s13 + $0xc] sm:$0xf] %v362_v3  ;;  %v368_v6 = vld [vmem:[%s339_s12 + $0x30] sm:$0xf] }
  0x16   : > { %365 = vst [vmem:[%s337_s13 + $0x10] sm:$0xf] %v364_v4  ;;  %v370_v7 = vld [vmem:[%s339_s12 + $0x38] sm:$0xf]  ;;  %367 = vst [vmem:[%s337_s13 + $0x14] sm:$0xf] %v366_v5 }
  0x17   : > { %369 = vst [vmem:[%s337_s13 + $0x18] sm:$0xf] %v368_v6  ;;  %371 = vst [vmem:[%s337_s13 + $0x1c] sm:$0xf] %v370_v7  ;;  %v372_v8 = vld [vmem:[%s339_s12 + $0x40] sm:$0xf] }
  0x18   : > { %373 = vst [vmem:[%s337_s13 + $0x20] sm:$0xf] %v372_v8 }
  0x19 PF: > { %p3070_p7 = scmp.ge.s32.totalorder %s3714_s19, 1  ;;  %p414_p8 = scmp.lt.s32.totalorder %s3714_s19, 3 }
  0x1b   : > { %p415_p9 = pnand %p3070_p7, %p414_p8 }
  0x1c   : > { %s421_s14 = sand.u32 (!%p415_p9), 1, %s3706_s17   ;;  %p463_p10 = scmp.lt.s32.totalorder (!%p415_p9), %s3794_s20, 1 }
  0x1d   : > { %418 = sbr.rel (%p415_p9) target bundleno = 1637 (0x665), region = 97 }
  0x1e   : > { %s3493_s15 = smul.u32 (!%p415_p9), 36, %s421_s14 }
  0x1f   : > { %s3494_s27 = smul.u32 (!%p415_p9), 24, %s421_s14 }
  0x20   : > { %s423_s23 = scalar_lea.vmem (!%p415_p9), [#allocation2], %s3493_s15 }
  0x21   : > { %s456_s28 = scalar_lea.vmem (!%p415_p9), [#allocation3], %s3494_s27 }
  0x22   : > { %v3528_v9 = vld [vmem:[%s4799_s1] sm:$0xff]   ;;  %vm732_vm0 = vcmask 588800   ;;  %vm769_vm1 = vcmask 1043456   ;;  %v3716_v13 = vmov 0   ;;  %v3525_v14 = vld [vmem:[%s423_s23 + $0x10] sm:$0xff]   ;;  %v3526_v16 = vld [vmem:[%s423_s23 + $0x8] sm:$0xff]  }
  0x23   : > { %3355 = vmatprep.mubr.msk.bf16.mxu0 %vm732_vm0, %v3528_v9  ;;  %v3523_v10 = vld [vmem:[%s423_s23 + $0x20] ss:$0 sps:$4 sm:$0xff]   ;;  %v3524_v11 = vld [vmem:[%s423_s23 + $0x18] sm:$0xff]   ;;  %3521 = vset.pattern.permute.xlu0 %v3716_v13  ;;  %v515_v15 = vld [vmem:[%s4800_s2 + $0x70] sm:$0xff]  ;;  %vm1448_vm2 = vcmask 523264   ;;  %s464_s12 = scalar_select %p463_p10, %s3794_s20, 1 }
  0x24   : > { %3491 = vmatprep.subr.msk.bf16.mxu0 %vm769_vm1, %v3523_v10  ;;  %v771_v12 = vsel %vm769_vm1, %v3523_v10, 0  ;;  %3522 = vset.pattern.permute.xlu1 %v3716_v13  ;;  %v516_v17 = vld [vmem:[%s4800_s2 + $0x78] sm:$0xff]  ;;  %v513_v18 = vld [vmem:[%s4800_s2 + $0x60] sm:$0xff]  ;;  %v514_v19 = vld [vmem:[%s4800_s2 + $0x68] sm:$0xff]  ;;  %s3275_s29 = sshll.u32 (%p3809_p5), %s3794_s20, 3 }
  0x25   : > { %3346 = vmatpush3.bf16.msra.mxu0 %v771_v12  ;;  %3467 = vmatprep.subr.bf16.mxu1 %v3716_v13  ;;  %v3527_v20 = vld [vmem:[%s423_s23] sm:$0xff]   ;;  %v511_v21 = vld [vmem:[%s4800_s2 + $0x50] sm:$0xff]  ;;  %v512_v22 = vld [vmem:[%s4800_s2 + $0x58] sm:$0xff]  ;;  %s3071_s13 = sshll.u32 %s464_s12, 2  ;;  %s2940_s23 = scalar_lea.vmem (%p3809_p5), %s4808_s10, %s3275_s29 }
  0x26   : > { %3347 = vmatprep.subr.bf16.mxu0 %v3524_v11  ;;  %597 = vperm.xlu0 %3521, %v515_v15   ;;  %v509_v23 = vld [vmem:[%s4800_s2 + $0x40] sm:$0xff]  ;;  %v3529_v24 = vld [vmem:[%s4799_s1 + $0x8] sm:$0xff]   ;;  %v3530_v25 = vld [vmem:[%s4799_s1 + $0x10] sm:$0xff]   ;;  %s466_s22 = scalar_lea.vmem %s4809_s11, %s3071_s13 }
  0x27   : > { %587 = vperm.xlu1 %3522, %v513_v18   ;;  %v510_v26 = vld [vmem:[%s4800_s2 + $0x48] sm:$0xff]  ;;  %v507_v27 = vld [vmem:[%s4800_s2 + $0x30] sm:$0xff]  ;;  %v508_v28 = vld [vmem:[%s4800_s2 + $0x38] sm:$0xff] }
  0x28   : > { %v3531_v29 = vld [vmem:[%s4799_s1 + $0x18] sm:$0xff]   ;;  %v3532_v30 = vld [vmem:[%s4799_s1 + $0x20] sm:$0xff]   ;;  %v506_v32 = vld [vmem:[%s4800_s2 + $0x28] sm:$0xff] }
  0x29   : > { %3348 = vmatpush3.bf16.msra.mxu0 %v3524_v11  ;;  %v505_v31 = vld [vmem:[%s4800_s2 + $0x20] sm:$0xff]  ;;  %v503_v33 = vld [vmem:[%s4800_s2 + $0x10] sm:$0xff]  ;;  %v504_v34 = vld [vmem:[%s4800_s2 + $0x18] sm:$0xff] }
  0x2a   : > { %3349 = vmatprep.subr.bf16.mxu0 %v3525_v14  ;;  %602 = vperm.xlu0 %3521, %v516_v17   ;;  %v501_v35 = vld [vmem:[%s4800_s2] sm:$0xff]  ;;  %v3533_v36 = vld [vmem:[%s4799_s1 + $0x28] sm:$0xff]   ;;  %v3534_v37 = vld [vmem:[%s4799_s1 + $0x30] sm:$0xff]  }
  0x2b   : > { %592 = vperm.xlu1 %3522, %v514_v19   ;;  %v502_v38 = vld [vmem:[%s4800_s2 + $0x8] sm:$0xff]  ;;  %v523_v39 = vld [vmem:[%s4800_s2 + $0xb0] sm:$0xff]  ;;  %v524_v40 = vld [vmem:[%s4800_s2 + $0xb8] sm:$0xff] }
  0x2c   : > { %v521_v41 = vld [vmem:[%s4800_s2 + $0xa0] sm:$0xff]  ;;  %v3535_v42 = vld [vmem:[%s4799_s1 + $0x38] sm:$0xff]   ;;  %v522_v44 = vld [vmem:[%s4800_s2 + $0xa8] sm:$0xff] }
  0x2d   : > { %3350 = vmatpush3.bf16.msra.mxu0 %v3525_v14  ;;  %v3536_v43 = vld [vmem:[%s4799_s1 + $0x40] sm:$0xff]   ;;  %v519_v45 = vld [vmem:[%s4800_s2 + $0x90] sm:$0xff]  ;;  %v520_v46 = vld [vmem:[%s4800_s2 + $0x98] sm:$0xff] }
  0x2e   : > { %3351 = vmatprep.subr.bf16.mxu0 %v3526_v16  ;;  %577 = vperm.xlu0 %3521, %v511_v21   ;;  %v517_v47 = vld [vmem:[%s4800_s2 + $0x80] sm:$0xff]  ;;  %v3537_v48 = vld [vmem:[%s4799_s1 + $0x48] sm:$0xff]   ;;  %v3538_v49 = vld [vmem:[%s4799_s1 + $0x50] sm:$0xff]  }
  0x2f   : > { %582 = vperm.xlu1 %3522, %v512_v22   ;;  %v518_v50 = vld [vmem:[%s4800_s2 + $0x88] sm:$0xff]  ;;  %v2724_v51 = vld [vmem:[%s4805_s7 + $0x50] sm:$0xff]  ;;  %v2725_v52 = vld [vmem:[%s4805_s7 + $0x58] sm:$0xff] }
  0x30   : > { %v2722_v53 = vld [vmem:[%s4805_s7 + $0x40] sm:$0xff]  ;;  %v3539_v54 = vld [vmem:[%s4799_s1 + $0x58] sm:$0xff]   ;;  %v2723_v55 = vld [vmem:[%s4805_s7 + $0x48] sm:$0xff] }
  0x31   : > { %3352 = vmatpush3.bf16.msra.mxu0 %v3526_v16  ;;  %v2720_v56 = vld [vmem:[%s4805_s7 + $0x30] sm:$0xff]  ;;  %v2721_v57 = vld [vmem:[%s4805_s7 + $0x38] sm:$0xff]  ;;  %v2718_v58 = vld [vmem:[%s4805_s7 + $0x20] sm:$0xff] }
  0x32   : > { %3353 = vmatprep.subr.bf16.mxu0 %v3527_v20  ;;  %567 = vperm.xlu0 %3521, %v509_v23   ;;  %v2719_v59 = vld [vmem:[%s4805_s7 + $0x28] sm:$0xff]  ;;  %v2716_v60 = vld [vmem:[%s4805_s7 + $0x10] sm:$0xff]  ;;  %v2717_v61 = vld [vmem:[%s4805_s7 + $0x18] sm:$0xff] }
  0x33   : > { %572 = vperm.xlu1 %3522, %v510_v26   ;;  %v2714_v62 = vld [vmem:[%s4805_s7] sm:$0xff]  ;;  %v2715_v63 = vld [vmem:[%s4805_s7 + $0x8] sm:$0xff]  ;;  %v2845_v2 = vld [vmem:[%s4807_s9 + $0x10] sm:$0xff] }
  0x34   : > { %v2843_v0 = vld [vmem:[%s4807_s9] sm:$0xff]  ;;  %v2844_v1 = vld [vmem:[%s4807_s9 + $0x8] sm:$0xff]  ;;  %v3545_v4 = vld [vmem:[%s4801_s3 + $0xd4] ss:$8 sps:$4 sm:$0xff]  }
  0x35   : > { %3354 = vmatpush3.bf16.msra.mxu0 %v3527_v20  ;;  %v3542_v3 = vld [vmem:[%s4801_s3 + $0x4] ss:$8 sps:$4 sm:$0xff]   ;;  %3198 = vmatprep.mubr.msk.bf16.mxu1 %vm1448_vm2, %v3545_v4 }
  0x36   : > { %1575 = vmatprep.subr.bf16.mxu0 %v3716_v13  ;;  %557 = vperm.xlu0 %3521, %v507_v27  }
  0x37   : > { %562 = vperm.xlu1 %3522, %v508_v28  }
  0x38   : > { %3356 = vmatmul.mubr.msk.bf16.vlgmr.msra.gmra.mxu0 %vm732_vm0, %v3529_v24 }
  0x39   : > { %3359 = vmatprep.mubr.msk.bf16.mxu0 %vm732_vm0, %v3530_v25 }
  0x3a   : > { %547 = vperm.xlu0 %3521, %v505_v31  }
  0x3b   : > { %552 = vperm.xlu1 %3522, %v506_v32  }
  0x3e   : > { %537 = vperm.xlu0 %3521, %v503_v33  }
  0x3f   : > { %542 = vperm.xlu1 %3522, %v504_v34  }
  0x40   : > { %3360 = vmatmul.mubr.msk.bf16.gmra.mxu0 %vm732_vm0, %v3531_v29 }
  0x41   : > { %3363 = vmatprep.mubr.msk.bf16.mxu0 %vm732_vm0, %v3532_v30 }
  0x42   : > { %527 = vperm.xlu0 %3521, %v501_v35  }
  0x43   : > { %532 = vperm.xlu1 %3522, %v502_v38  }
  0x46   : > { %637 = vperm.xlu0 %3521, %v523_v39  }
  0x47   : > { %642 = vperm.xlu1 %3522, %v524_v40  }
  0x48   : > { %3364 = vmatmul.mubr.msk.bf16.gmra.mxu0 %vm732_vm0, %v3533_v36 }
  0x49   : > { %3367 = vmatprep.mubr.msk.bf16.mxu0 %vm732_vm0, %v3534_v37 }
  0x4a   : > { %627 = vperm.xlu0 %3521, %v521_v41  }
  0x4b   : > { %632 = vperm.xlu1 %3522, %v522_v44  }
  0x4e   : > { %617 = vperm.xlu0 %3521, %v519_v45  }
  0x4f   : > { %622 = vperm.xlu1 %3522, %v520_v46  }
  0x50   : > { %3368 = vmatmul.mubr.msk.bf16.gmra.mxu0 %vm732_vm0, %v3535_v42 }
  0x51   : > { %3371 = vmatprep.mubr.msk.bf16.mxu0 %vm732_vm0, %v3536_v43 }
  0x52   : > { %607 = vperm.xlu0 %3521, %v517_v47  }
  0x53   : > { %612 = vperm.xlu1 %3522, %v518_v50  }
  0x56   : > { %2778 = vperm.xlu0 %3521, %v2724_v51  }
  0x57   : > { %2783 = vperm.xlu1 %3522, %v2725_v52  }
  0x58   : > { %3372 = vmatmul.mubr.msk.bf16.gmra.mxu0 %vm732_vm0, %v3537_v48 }
  0x59   : > { %3375 = vmatprep.mubr.msk.bf16.mxu0 %vm732_vm0, %v3538_v49 }
  0x5a   : > { %2768 = vperm.xlu0 %3521, %v2722_v53  }
  0x5b   : > { %2773 = vperm.xlu1 %3522, %v2723_v55  }
  0x5e   : > { %2758 = vperm.xlu0 %3521, %v2720_v56  }
  0x5f   : > { %2763 = vperm.xlu1 %3522, %v2721_v57  }
  0x60   : > { %3376 = vmatmul.mubr.msk.bf16.gmra.mxu0 %vm732_vm0, %v3539_v54 }
  0x61   : > { %3185 = vmatprep.mubr.msk.bf16.mxu0 %vm1448_vm2, %v3542_v3 }
  0x62   : > { %2748 = vperm.xlu0 %3521, %v2718_v58  }
  0x63   : > { %2753 = vperm.xlu1 %3522, %v2719_v59  }
  0x66   : > { %2738 = vperm.xlu0 %3521, %v2716_v60  }
  0x67   : > { %2743 = vperm.xlu1 %3522, %v2717_v61  }
  0x6a   : > { %2728 = vperm.xlu0 %3521, %v2714_v62  }
  0x6b   : > { %2733 = vperm.xlu1 %3522, %v2715_v63  }
  0x6e   : > { %2848 = vperm.xlu0 %3521, %v2843_v0  }
  0x6f   : > { %2853 = vperm.xlu1 %3522, %v2844_v1  }
  0x72   : > { %2858 = vperm.xlu0 %3521, %v2845_v2  }
  0xa1   : > { %v598_v7 = vpop.permute.xlu0 %597 }
  0xa2   : > { %v588_v5 = vpop.permute.xlu1 %587 }
  0xa5   : > { %v603_v12 = vpop.permute.xlu0 %602 }
  0xa6   : > { %v593_v10 = vpop.permute.xlu1 %592 }
  0xa9   : > { %v578_v18 = vpop.permute.xlu0 %577 }
  0xaa   : > { %v583_v16 = vpop.permute.xlu1 %582 }
  0xad   : > { %v568_v23 = vpop.permute.xlu0 %567 }
  0xae   : > { %v573_v21 = vpop.permute.xlu1 %572 }
  0xb1   : > { %v558_v29 = vpop.permute.xlu0 %557 }
  0xb2   : > { %v563_v26 = vpop.permute.xlu1 %562 }
  0xb5   : > { %v548_v40 = vpop.permute.xlu0 %547 }
  0xb6   : > { %v553_v35 = vpop.permute.xlu1 %552 }
  0xb9   : > { %v538_v57 = vpop.permute.xlu0 %537 }
  0xba   : > { %v543_v52 = vpop.permute.xlu1 %542 }
  0xbe   : > { %v533_v2 = vpop.permute.xlu1 %532 }
  0xf8   : > { %v4001_v6 = vpop.f32.mrf.mxu0 }
  0xfa   : > { %v4003_v8 = vpop.f32.mrf.mxu0 }
  0xfc   : > { %v4005_v9 = vpop.f32.mrf.mxu0 }
  0xfe   : > { %v4007_v11 = vpop.f32.mrf.mxu0 }
 0x100   : > { %v3361_v14 = vpop.f32.mrf.mxu0 }
 0x101   : > { %v832_v63 = vadd.f32 %v3361_v14, %v558_v29 }
 0x102   : > { %v4009_v15 = vpop.f32.mrf.mxu0 }
 0x103   : > { %v824_v14 = vadd.f32 %v4009_v15, %v548_v40  ;;  %vm908_vm12 = vcmp.gt.f32.partialorder %v832_v63, 0.0 }
 0x104   : > { %v3362_v17 = vpop.f32.mrf.mxu0 }
 0x105   : > { %v835_v59 = vadd.f32 %v3362_v17, %v563_v26  ;;  %v930_v15 = vmul.f32 0.01, %v824_v14  ;;  %vm906_vm14 = vcmp.gt.f32.partialorder %v824_v14, 0.0 }
 0x106   : > { %v4011_v19 = vpop.f32.mrf.mxu0 }
 0x107   : > { %v933_v4 = vmul.f32 0.01, %v835_v59  ;;  %vm909_vm11 = vcmp.gt.f32.partialorder %v835_v59, 0.0 }
 0x108   : > { %v3365_v20 = vpop.f32.mrf.mxu0 }
 0x109   : > { %v848_v41 = vadd.f32 %v3365_v20, %v578_v18  ;;  %v819_v20 = vadd.f32 %v4005_v9, %v543_v52  ;;  %v811_v9 = vadd.f32 %v4007_v11, %v533_v2 }
 0x10a   : > { %v839_v22 = vpop.f32.mrf.mxu0 }
 0x10b   : > { %v936_v54 = vmul.f32 0.01, %v848_v41  ;;  %v840_v55 = vadd.f32 %v839_v22, %v568_v23  ;;  %vm912_vm8 = vcmp.gt.f32.partialorder %v848_v41, 0.0  ;;  %v643_v22 = vpop.permute.xlu1 %642  ;;  %vm905_vm15 = vcmp.gt.f32.partialorder %v819_v20, 0.0 }
 0x10c   : > { %v3366_v24 = vpop.f32.mrf.mxu0  ;;  %vm903_vm1 = vcmp.gt.f32.partialorder %v811_v9, 0.0 }
 0x10d   : > { %v851_v37 = vadd.f32 %v3366_v24, %v583_v16  ;;  %v960_v0 = vsel %vm912_vm8, %v848_v41, %v936_v54  ;;  %v934_v1 = vmul.f32 0.01, %v840_v55  ;;  %vm910_vm10 = vcmp.gt.f32.partialorder %v840_v55, 0.0 }
 0x10e   : > { %v842_v25 = vpop.f32.mrf.mxu0  ;;  %v932_v16 = vmul.f32 0.01, %v832_v63  ;;  %v816_v24 = vadd.f32 %v4001_v6, %v538_v57 }
 0x10f   : > { %v937_v49 = vmul.f32 0.01, %v851_v37  ;;  %v843_v50 = vadd.f32 %v842_v25, %v573_v21  ;;  %vm913_vm7 = vcmp.gt.f32.partialorder %v851_v37, 0.0  ;;  %v958_v17 = vsel %vm910_vm10, %v840_v55, %v934_v1 }
 0x110   : > { %v3369_v27 = vpop.f32.mrf.mxu0  ;;  %v957_v21 = vsel %vm909_vm11, %v835_v59, %v933_v4  ;;  %v956_v25 = vsel %vm908_vm12, %v832_v63, %v932_v16  ;;  %vm904_vm0 = vcmp.gt.f32.partialorder %v816_v24, 0.0  ;;  %vm2260_vm12 = vcmask 392192  }
 0x111   : > { %v864_v28 = vadd.f32 %v3369_v27, %v598_v7  ;;  %v961_v60 = vsel %vm913_vm7, %v851_v37, %v937_v49  ;;  %v935_v61 = vmul.f32 0.01, %v843_v50  ;;  %vm911_vm9 = vcmp.gt.f32.partialorder %v843_v50, 0.0 }
 0x112   : > { %v855_v30 = vpop.f32.mrf.mxu0  ;;  %v1063_v3 = vpack.c.bf16 %v961_v60, %v960_v0  ;;  %v1061_v27 = vpack.c.bf16 %v957_v21, %v956_v25  ;;  %v3549_v21 = vld [vmem:[%s4801_s3 + $0xe4] ss:$8 sps:$4 sm:$0xff]   ;;  %v3557_v25 = vld [vmem:[%s4801_s3 + $0xf0] ss:$8 sps:$4 sm:$0xff]  }
 0x113   : > { %v940_v31 = vmul.f32 0.01, %v864_v28  ;;  %vm916_vm3 = vcmp.gt.f32.partialorder %v864_v28, 0.0  ;;  %v856_v33 = vadd.f32 %v855_v30, %v588_v5  ;;  %v827_v5 = vadd.f32 %v4011_v19, %v553_v35 }
 0x114   : > { %v3370_v32 = vpop.f32.mrf.mxu0  ;;  %v959_v7 = vsel %vm911_vm9, %v843_v50, %v935_v61 }
 0x115   : > { %v867_v34 = vadd.f32 %v3370_v32, %v603_v12  ;;  %v964_v42 = vsel %vm916_vm3, %v864_v28, %v940_v31  ;;  %v938_v44 = vmul.f32 0.01, %v856_v33  ;;  %vm914_vm6 = vcmp.gt.f32.partialorder %v856_v33, 0.0 }
 0x116   : > { %v858_v36 = vpop.f32.mrf.mxu0  ;;  %v1062_v18 = vpack.c.bf16 %v959_v7, %v958_v17  ;;  %v931_v19 = vmul.f32 0.01, %v827_v5  ;;  %vm907_vm13 = vcmp.gt.f32.partialorder %v827_v5, 0.0  ;;  %v929_v28 = vmul.f32 0.01, %v819_v20 }
 0x117   : > { %vm917_vm4 = vcmp.gt.f32.partialorder %v867_v34, 0.0  ;;  %v941_v38 = vmul.f32 0.01, %v867_v34  ;;  %v859_v39 = vadd.f32 %v858_v36, %v593_v10  ;;  %v962_v56 = vsel %vm914_vm6, %v856_v33, %v938_v44  ;;  %v528_v10 = vpop.permute.xlu0 %527  ;;  %v633_v33 = vpop.permute.xlu1 %632  ;;  %v3540_v17 = vld [vmem:[%s4801_s3] ss:$8 sps:$4 sm:$0xff]  }
 0x118   : > { %v4013_v43 = vpop.f32.mrf.mxu0  ;;  %v955_v29 = vsel %vm907_vm13, %v827_v5, %v931_v19  ;;  %v928_v31 = vmul.f32 0.01, %v816_v24  ;;  %v808_v6 = vadd.f32 %v4003_v8, %v528_v10  ;;  %v954_v32 = vsel %vm906_vm14, %v824_v14, %v930_v15  ;;  %v3551_v19 = vld [vmem:[%s4801_s3 + $0xe0] ss:$8 sps:$4 sm:$0xff]   ;;  %v3558_v15 = vld [vmem:[%s4801_s3 + $0x34] ss:$8 sps:$4 sm:$0xff]  }
 0x119   : > { %v965_v45 = vsel %vm917_vm4, %v867_v34, %v941_v38  ;;  %vm915_vm5 = vcmp.gt.f32.partialorder %v859_v39, 0.0  ;;  %v939_v46 = vmul.f32 0.01, %v859_v39  ;;  %v1060_v34 = vpack.c.bf16 %v955_v29, %v954_v32  ;;  %v3567_v29 = vld [vmem:[%s4801_s3 + $0x114] ss:$8 sps:$4 sm:$0xff]  }
 0x11a   : > { %v1065_v47 = vpack.c.bf16 %v965_v45, %v964_v42  ;;  %v4015_v48 = vpop.f32.mrf.mxu0  ;;  %v953_v35 = vsel %vm905_vm15, %v819_v20, %v929_v28  ;;  %v927_v36 = vmul.f32 0.01, %v811_v9  ;;  %v926_v40 = vmul.f32 0.01, %v808_v6  ;;  %v3546_v20 = vld [vmem:[%s4801_s3 + $0x14] ss:$8 sps:$4 sm:$0xff]  }
 0x11b   : > { %v963_v51 = vsel %vm915_vm5, %v859_v39, %v939_v46  ;;  %v638_v26 = vpop.permute.xlu0 %637  ;;  %v952_v39 = vsel %vm904_vm0, %v816_v24, %v928_v31  ;;  %vm902_vm3 = vcmp.gt.f32.partialorder %v808_v6, 0.0  ;;  %v623_v46 = vpop.permute.xlu1 %622  ;;  %v3554_v24 = vld [vmem:[%s4801_s3 + $0x20] ss:$8 sps:$4 sm:$0xff]   ;;  %v3569_v31 = vld [vmem:[%s4801_s3 + $0x110] ss:$8 sps:$4 sm:$0xff]   ;;  %vm2192_vm13 = vcmask 1040384  }
 0x11c   : > { %v4017_v53 = vpop.f32.mrf.mxu0  ;;  %1576 = vmatpush1.bf16.msra.mxu0 %v1065_v47  ;;  %3479 = vmatpush1.bf16.msra.mxu1 %v1065_v47  ;;  %v1064_v58 = vpack.c.bf16 %v963_v51, %v962_v56  ;;  %v1059_v8 = vpack.c.bf16 %v953_v35, %v952_v39  ;;  %v951_v42 = vsel %vm903_vm1, %v811_v9, %v927_v36  ;;  %v3563_v28 = vld [vmem:[%s4801_s3 + $0x100] ss:$8 sps:$4 sm:$0xff]   ;;  %v3564_v9 = vld [vmem:[%s4801_s3 + $0x44] ss:$8 sps:$4 sm:$0xff]   ;;  %v3579_v36 = vld [vmem:[%s4801_s3 + $0x134] ss:$8 sps:$4 sm:$0xff]  }
 0x11d   : > { %1577 = vmatprep.subr.bf16.mxu0 %v3716_v13  ;;  %3468 = vmatprep.subr.bf16.mxu1 %v3716_v13  ;;  %v950_v47 = vsel %vm902_vm3, %v808_v6, %v926_v40  ;;  %v883_v54 = vadd.f32 %v4017_v53, %v623_v46  ;;  %v3570_v6 = vld [vmem:[%s4801_s3 + $0x54] ss:$8 sps:$4 sm:$0xff]   ;;  %v3573_v32 = vld [vmem:[%s4801_s3 + $0x124] ss:$8 sps:$4 sm:$0xff]   ;;  %v3584_v40 = vld [vmem:[%s4801_s3 + $0x70] ss:$8 sps:$4 sm:$0xff]  }
 0x11e   : > { %v4021_v62 = vpop.f32.mrf.mxu0  ;;  %v1058_v52 = vpack.c.bf16 %v951_v42, %v950_v47  ;;  %v3576_v35 = vld [vmem:[%s4801_s3 + $0x64] ss:$8 sps:$4 sm:$0xff]   ;;  %v3597_v42 = vld [vmem:[%s4801_s3 + $0x154] ss:$8 sps:$4 sm:$0xff]   ;;  %vm2194_vm14 = vcmask 1041408   ;;  %vm2602_vm15 = vcmask 785408  }
 0x11f   : > { %v628_v11 = vpop.permute.xlu0 %627  ;;  %v613_v60 = vpop.permute.xlu1 %612  ;;  %v945_v63 = vmul.f32 0.01, %v883_v54  ;;  %vm921_vm8 = vcmp.gt.f32.partialorder %v883_v54, 0.0  ;;  %v3591_v39 = vld [vmem:[%s4801_s3 + $0x144] ss:$8 sps:$4 sm:$0xff]  }
 0x120   : > { %1578 = vmatpush1.bf16.msra.mxu0 %v1064_v58  ;;  %3480 = vmatpush1.bf16.msra.mxu1 %v1064_v58  ;;  %v3377_v12 = vpop.f32.mrf.mxu0  ;;  %v875_v0 = vadd.f32 %v4021_v62, %v613_v60  ;;  %v3588_v46 = vld [vmem:[%s4801_s3 + $0x94] ss:$8 sps:$4 sm:$0xff]   ;;  %v3603_v47 = vld [vmem:[%s4801_s3 + $0x164] ss:$8 sps:$4 sm:$0xff]   ;;  %v3717_v60 = vmov 0.0  }
 0x121   : > { %1579 = vmatprep.subr.bf16.mxu0 %v3716_v13  ;;  %3469 = vmatprep.subr.bf16.mxu1 %v3716_v13  ;;  %v896_v41 = vadd.f32 %v3377_v12, %v638_v26  ;;  %v969_v5 = vsel %vm921_vm8, %v883_v54, %v945_v63  ;;  %v3561_v26 = vld [vmem:[%s4801_s3 + $0x104] ss:$8 sps:$4 sm:$0xff]   ;;  %v3596_v54 = vld [vmem:[%s4801_s3 + $0xa0] ss:$8 sps:$4 sm:$0xff]  }
 0x122   : > { %v887_v23 = vpop.f32.mrf.mxu0  ;;  %v943_v7 = vmul.f32 0.01, %v875_v0  ;;  %vm919_vm10 = vcmp.gt.f32.partialorder %v875_v0, 0.0 }
 0x123   : > { %v948_v49 = vmul.f32 0.01, %v896_v41  ;;  %v888_v50 = vadd.f32 %v887_v23, %v628_v11  ;;  %v618_v51 = vpop.permute.xlu0 %617  ;;  %vm924_vm5 = vcmp.gt.f32.partialorder %v896_v41, 0.0  ;;  %v3555_v23 = vld [vmem:[%s4801_s3 + $0xf4] ss:$8 sps:$4 sm:$0xff]  }
 0x124   : > { %1580 = vmatpush1.bf16.msra.mxu0 %v1063_v3  ;;  %3481 = vmatpush1.bf16.msra.mxu1 %v1063_v3  ;;  %v3378_v30 = vpop.f32.mrf.mxu0  ;;  %v880_v57 = vadd.f32 %v4013_v43, %v618_v51  ;;  %v967_v12 = vsel %vm919_vm10, %v875_v0, %v943_v7  ;;  %v3581_v11 = vld [vmem:[%s4801_s3 + $0x130] ss:$8 sps:$4 sm:$0xff]   ;;  %v3594_v51 = vld [vmem:[%s4801_s3 + $0xa4] ss:$8 sps:$4 sm:$0xff]  }
 0x125   : > { %1581 = vmatprep.subr.bf16.mxu0 %v3716_v13  ;;  %3470 = vmatprep.subr.bf16.mxu1 %v3716_v13  ;;  %v899_v37 = vadd.f32 %v3378_v30, %v643_v22  ;;  %v972_v58 = vsel %vm924_vm5, %v896_v41, %v948_v49  ;;  %v946_v59 = vmul.f32 0.01, %v888_v50  ;;  %vm922_vm7 = vcmp.gt.f32.partialorder %v888_v50, 0.0  ;;  %v3552_v22 = vld [vmem:[%s4801_s3 + $0x24] ss:$8 sps:$4 sm:$0xff]  }
 0x126   : > { %v890_v38 = vpop.f32.mrf.mxu0  ;;  %v944_v2 = vmul.f32 0.01, %v880_v57  ;;  %vm920_vm9 = vcmp.gt.f32.partialorder %v880_v57, 0.0  ;;  %v3566_v30 = vld [vmem:[%s4801_s3 + $0x40] ss:$8 sps:$4 sm:$0xff]  }
 0x127   : > { %v949_v44 = vmul.f32 0.01, %v899_v37  ;;  %v891_v45 = vadd.f32 %v890_v38, %v633_v33  ;;  %vm925_vm4 = vcmp.gt.f32.partialorder %v899_v37, 0.0  ;;  %v608_v1 = vpop.permute.xlu0 %607  ;;  %v970_v3 = vsel %vm922_vm7, %v888_v50, %v946_v59  ;;  %v3572_v33 = vld [vmem:[%s4801_s3 + $0x50] ss:$8 sps:$4 sm:$0xff]  }
 0x128   : > { %1582 = vmatpush1.bf16.msra.mxu0 %v1062_v18  ;;  %3482 = vmatpush1.bf16.msra.mxu1 %v1062_v18  ;;  %v872_v43 = vadd.f32 %v4015_v48, %v608_v1  ;;  %v968_v62 = vsel %vm920_vm9, %v880_v57, %v944_v2  ;;  %v3543_v18 = vld [vmem:[%s4801_s3 + $0xd0] ss:$8 sps:$4 sm:$0xff]   ;;  %v3582_v38 = vld [vmem:[%s4801_s3 + $0x74] ss:$8 sps:$4 sm:$0xff]   ;;  %v3593_v41 = vld [vmem:[%s4801_s3 + $0x140] ss:$8 sps:$4 sm:$0xff]  }
 0x129   : > { %1583 = vmatprep.subr.bf16.mxu0 %v3716_v13  ;;  %3471 = vmatprep.subr.bf16.mxu1 %v3716_v13  ;;  %v973_v55 = vsel %vm925_vm4, %v899_v37, %v949_v44  ;;  %v947_v56 = vmul.f32 0.01, %v891_v45  ;;  %vm923_vm6 = vcmp.gt.f32.partialorder %v891_v45, 0.0  ;;  %v1067_v48 = vpack.c.bf16 %v969_v5, %v968_v62  ;;  %v3578_v37 = vld [vmem:[%s4801_s3 + $0x60] ss:$8 sps:$4 sm:$0xff]  }
 0x12a   : > { %v1069_v61 = vpack.c.bf16 %v973_v55, %v972_v58  ;;  %v942_v10 = vmul.f32 0.01, %v872_v43  ;;  %vm918_vm11 = vcmp.gt.f32.partialorder %v872_v43, 0.0  ;;  %v3587_v44 = vld [vmem:[%s4801_s3 + $0x80] ss:$8 sps:$4 sm:$0xff]  }
 0x12b   : > { %v971_v53 = vsel %vm923_vm6, %v891_v45, %v947_v56  ;;  %v3599_v45 = vld [vmem:[%s4801_s3 + $0x150] ss:$8 sps:$4 sm:$0xff]   ;;  %v3605_v50 = vld [vmem:[%s4801_s3 + $0x160] ss:$8 sps:$4 sm:$0xff]   ;;  %v3600_v56 = vld [vmem:[%s4801_s3 + $0xb4] ss:$8 sps:$4 sm:$0xff]  }
 0x12c   : > { %1584 = vmatpush1.bf16.msra.mxu0 %v1061_v27  ;;  %3483 = vmatpush1.bf16.msra.mxu1 %v1061_v27  ;;  %v1068_v4 = vpack.c.bf16 %v971_v53, %v970_v3  ;;  %v966_v16 = vsel %vm918_vm11, %v872_v43, %v942_v10  ;;  %v3560_v27 = vld [vmem:[%s4801_s3 + $0x30] ss:$8 sps:$4 sm:$0xff]   ;;  %v3606_v58 = vld [vmem:[%s4801_s3 + $0xc4] ss:$8 sps:$4 sm:$0xff]   ;;  %v3608_v59 = vld [vmem:[%s4801_s3 + $0xc0] ss:$8 sps:$4 sm:$0xff]  }
 0x12d   : > { %1585 = vmatprep.subr.bf16.mxu0 %v3716_v13  ;;  %3472 = vmatprep.subr.bf16.mxu1 %v3716_v13  ;;  %v1066_v14 = vpack.c.bf16 %v967_v12, %v966_v16  ;;  %v3590_v49 = vld [vmem:[%s4801_s3 + $0x90] ss:$8 sps:$4 sm:$0xff]  }
 0x12e   : > { %v3611_v55 = vld [vmem:[%s4801_s3 + $0x170] ss:$8 sps:$4 sm:$0xff]  }
 0x12f   : > { %v3602_v57 = vld [vmem:[%s4801_s3 + $0xb0] ss:$8 sps:$4 sm:$0xff]  }
 0x130   : > { %1586 = vmatpush1.bf16.msra.mxu0 %v1060_v34  ;;  %3484 = vmatpush1.bf16.msra.mxu1 %v1060_v34  ;;  %v3575_v34 = vld [vmem:[%s4801_s3 + $0x120] ss:$8 sps:$4 sm:$0xff]  }
 0x131   : > { %1587 = vmatprep.subr.bf16.mxu0 %v3716_v13  ;;  %3473 = vmatprep.subr.bf16.mxu1 %v3716_v13 }
 0x134   : > { %1588 = vmatpush1.bf16.msra.mxu0 %v1059_v8  ;;  %3485 = vmatpush1.bf16.msra.mxu1 %v1059_v8  ;;  %v3585_v8 = vld [vmem:[%s4801_s3 + $0x84] ss:$8 sps:$4 sm:$0xff]  }
 0x135   : > { %1589 = vmatprep.subr.bf16.mxu0 %v3716_v13  ;;  %3474 = vmatprep.subr.bf16.mxu1 %v3716_v13 }
 0x138   : > { %1590 = vmatpush1.bf16.msra.mxu0 %v1058_v52  ;;  %3486 = vmatpush1.bf16.msra.mxu1 %v1058_v52  ;;  %v3609_v52 = vld [vmem:[%s4801_s3 + $0x174] ss:$8 sps:$4 sm:$0xff]  }
 0x139   : > { %1599 = vmatprep.subr.bf16.mxu0 %v3716_v13  ;;  %3475 = vmatprep.subr.bf16.mxu1 %v3716_v13 }
 0x13c   : > { %1600 = vmatpush2.bf16.msra.mxu0 %v1069_v61  ;;  %3487 = vmatpush2.bf16.msra.mxu1 %v1069_v61  ;;  %v2017_v61 = vld [vmem:[%s4802_s4 + $0x8] sm:$0xff] }
 0x13d   : > { %1601 = vmatprep.subr.bf16.mxu0 %v3716_v13  ;;  %3476 = vmatprep.subr.bf16.mxu1 %v3716_v13 }
 0x140   : > { %1602 = vmatpush2.bf16.msra.mxu0 %v1068_v4  ;;  %3488 = vmatpush2.bf16.msra.mxu1 %v1068_v4 }
 0x141   : > { %1603 = vmatprep.subr.bf16.mxu0 %v3716_v13  ;;  %3477 = vmatprep.subr.bf16.mxu1 %v3716_v13 }
 0x144   : > { %1604 = vmatpush2.bf16.msra.mxu0 %v1067_v48  ;;  %3489 = vmatpush2.bf16.msra.mxu1 %v1067_v48 }
 0x145   : > { %1605 = vmatprep.subr.bf16.mxu0 %v3716_v13  ;;  %3478 = vmatprep.subr.bf16.mxu1 %v3716_v13  ;;  %v3548_v13 = vld [vmem:[%s4801_s3 + $0x10] ss:$8 sps:$4 sm:$0xff]  }
 0x148   : > { %1606 = vmatpush2.bf16.msra.mxu0 %v1066_v14  ;;  %3490 = vmatpush2.bf16.msra.mxu1 %v1066_v14 }
 0x149   : > { %2070 = vmatprep.subr.mxu0 %v3717_v60 }
 0x14b   : > { %1608 = vmatmul.mubr.bf16.vlgmr.msra.gmra.mxu0 %v3540_v17  ;;  %1712 = vmatmul.mubr.bf16.vlgmr.msra.gmra.mxu1 %v3543_v18 }
 0x14c   : > { %3186 = vmatprep.mubr.msk.bf16.mxu0 %vm1448_vm2, %v3546_v20  ;;  %3199 = vmatprep.mubr.msk.bf16.mxu1 %vm1448_vm2, %v3549_v21 }
 0x153   : > { %1616 = vmatmul.mubr.bf16.gmra.mxu0 %v3548_v13  ;;  %1720 = vmatmul.mubr.bf16.gmra.mxu1 %v3551_v19 }
 0x154   : > { %3187 = vmatprep.mubr.msk.bf16.mxu0 %vm1448_vm2, %v3552_v22  ;;  %3200 = vmatprep.mubr.msk.bf16.mxu1 %vm1448_vm2, %v3555_v23 }
 0x15b   : > { %1624 = vmatmul.mubr.bf16.gmra.mxu0 %v3554_v24  ;;  %1728 = vmatmul.mubr.bf16.gmra.mxu1 %v3557_v25 }
 0x15c   : > { %3188 = vmatprep.mubr.msk.bf16.mxu0 %vm1448_vm2, %v3558_v15  ;;  %3201 = vmatprep.mubr.msk.bf16.mxu1 %vm1448_vm2, %v3561_v26 }
 0x163   : > { %1632 = vmatmul.mubr.bf16.gmra.mxu0 %v3560_v27  ;;  %1736 = vmatmul.mubr.bf16.gmra.mxu1 %v3563_v28 }
 0x164   : > { %3189 = vmatprep.mubr.msk.bf16.mxu0 %vm1448_vm2, %v3564_v9  ;;  %3202 = vmatprep.mubr.msk.bf16.mxu1 %vm1448_vm2, %v3567_v29 }
 0x16b   : > { %1640 = vmatmul.mubr.bf16.gmra.mxu0 %v3566_v30  ;;  %1744 = vmatmul.mubr.bf16.gmra.mxu1 %v3569_v31 }
 0x16c   : > { %3190 = vmatprep.mubr.msk.bf16.mxu0 %vm1448_vm2, %v3570_v6  ;;  %3203 = vmatprep.mubr.msk.bf16.mxu1 %vm1448_vm2, %v3573_v32 }
 0x173   : > { %1648 = vmatmul.mubr.bf16.gmra.mxu0 %v3572_v33  ;;  %1752 = vmatmul.mubr.bf16.gmra.mxu1 %v3575_v34 }
 0x174   : > { %3191 = vmatprep.mubr.msk.bf16.mxu0 %vm1448_vm2, %v3576_v35  ;;  %3204 = vmatprep.mubr.msk.bf16.mxu1 %vm1448_vm2, %v3579_v36 }
 0x17b   : > { %1656 = vmatmul.mubr.bf16.gmra.mxu0 %v3578_v37  ;;  %1760 = vmatmul.mubr.bf16.gmra.mxu1 %v3581_v11 }
 0x17c   : > { %3192 = vmatprep.mubr.msk.bf16.mxu0 %vm1448_vm2, %v3582_v38  ;;  %3205 = vmatprep.mubr.msk.bf16.mxu1 %vm1448_vm2, %v3591_v39 }
 0x183   : > { %1664 = vmatmul.mubr.bf16.gmra.mxu0 %v3584_v40  ;;  %1768 = vmatmul.mubr.bf16.gmra.mxu1 %v3593_v41 }
 0x184   : > { %3193 = vmatprep.mubr.msk.bf16.mxu0 %vm1448_vm2, %v3585_v8  ;;  %3206 = vmatprep.mubr.msk.bf16.mxu1 %vm1448_vm2, %v3597_v42 }
 0x18b   : > { %1672 = vmatmul.mubr.bf16.gmra.mxu0 %v3587_v44  ;;  %1776 = vmatmul.mubr.bf16.gmra.mxu1 %v3599_v45 }
 0x18c   : > { %3194 = vmatprep.mubr.msk.bf16.mxu0 %vm1448_vm2, %v3588_v46  ;;  %3207 = vmatprep.mubr.msk.bf16.mxu1 %vm1448_vm2, %v3603_v47 }
 0x193   : > { %1680 = vmatmul.mubr.bf16.gmra.mxu0 %v3590_v49  ;;  %1784 = vmatmul.mubr.bf16.gmra.mxu1 %v3605_v50 }
 0x194   : > { %3195 = vmatprep.mubr.msk.bf16.mxu0 %vm1448_vm2, %v3594_v51  ;;  %3208 = vmatprep.mubr.msk.bf16.mxu1 %vm1448_vm2, %v3609_v52 }
 0x19b   : > { %1688 = vmatmul.mubr.bf16.gmra.mxu0 %v3596_v54  ;;  %1792 = vmatmul.mubr.bf16.gmra.mxu1 %v3611_v55 }
 0x19c   : > { %3196 = vmatprep.mubr.msk.bf16.mxu0 %vm1448_vm2, %v3600_v56 }
 0x1a3   : > { %1696 = vmatmul.mubr.bf16.gmra.mxu0 %v3602_v57 }
 0x1a4   : > { %3197 = vmatprep.mubr.msk.bf16.mxu0 %vm1448_vm2, %v3606_v58 }
 0x1ab   : > { %1704 = vmatmul.mubr.bf16.gmra.mxu0 %v3608_v59 }
 0x1ac   : > { %3227 = vmatprep.mubr.msk.f32.mxu0 %vm1448_vm2, %v2017_v61 }
 0x20b   : > { %v4218_v63 = vpop.f32.mrf.mxu0  ;;  %v1713_v0 = vpop.f32.mrf.mxu1 }
 0x20d   : > { %v1611_v53 = vpop.f32.mrf.mxu0  ;;  %v1715_v1 = vpop.f32.mrf.mxu1 }
 0x20f   : > { %v4220_v2 = vpop.f32.mrf.mxu0  ;;  %v1716_v43 = vpop.f32.mrf.mxu1 }
 0x211   : > { %v1614_v3 = vpop.f32.mrf.mxu0  ;;  %v1718_v4 = vpop.f32.mrf.mxu1 }
 0x213   : > { %v1617_v5 = vpop.f32.mrf.mxu0  ;;  %v1721_v7 = vpop.f32.mrf.mxu1 }
 0x214   : > { %v4222_v62 = vmul.f32 %v1713_v0, %v1617_v5 }
 0x215   : > { %v1619_v10 = vpop.f32.mrf.mxu0  ;;  %v1723_v48 = vpop.f32.mrf.mxu1 }
 0x217   : > { %v1620_v12 = vpop.f32.mrf.mxu0  ;;  %v4224_v16 = vpop.f32.mrf.mxu1 }
 0x218   : > { %v4226_v14 = vmul.f32 %v1716_v43, %v1620_v12 }
 0x219   : > { %v1622_v17 = vpop.f32.mrf.mxu0  ;;  %v1726_v18 = vpop.f32.mrf.mxu1 }
 0x21b   : > { %v1625_v20 = vpop.f32.mrf.mxu0  ;;  %v4228_v21 = vpop.f32.mrf.mxu1 }
 0x21c   : > { %v4230_v13 = vmul.f32 %v1721_v7, %v1625_v20 }
 0x21d   : > { %v1627_v19 = vpop.f32.mrf.mxu0  ;;  %v1731_v22 = vpop.f32.mrf.mxu1 }
 0x21f   : > { %v4232_v23 = vpop.f32.mrf.mxu0  ;;  %v4234_v24 = vpop.f32.mrf.mxu1 }
 0x221   : > { %v1630_v25 = vpop.f32.mrf.mxu0  ;;  %v1734_v15 = vpop.f32.mrf.mxu1 }
 0x223   : > { %v4236_v26 = vpop.f32.mrf.mxu0  ;;  %v4238_v27 = vpop.f32.mrf.mxu1 }
 0x225   : > { %v1635_v28 = vpop.f32.mrf.mxu0  ;;  %v1739_v9 = vpop.f32.mrf.mxu1 }
 0x227   : > { %v4240_v29 = vpop.f32.mrf.mxu0  ;;  %v1740_v30 = vpop.f32.mrf.mxu1 }
 0x229   : > { %v1638_v31 = vpop.f32.mrf.mxu0  ;;  %v1742_v6 = vpop.f32.mrf.mxu1 }
 0x22b   : > { %v4242_v32 = vpop.f32.mrf.mxu0  ;;  %v1745_v33 = vpop.f32.mrf.mxu1 }
 0x22d   : > { %v1643_v34 = vpop.f32.mrf.mxu0  ;;  %v1747_v35 = vpop.f32.mrf.mxu1 }
 0x22e   : > { %v2036_v35 = vmul.f32 %v4238_v27, %v4242_v32  ;;  %v2033_v32 = vmul.f32 %v4224_v16, %v4232_v23 }
 0x22f   : > { %v1644_v36 = vpop.f32.mrf.mxu0  ;;  %v1748_v37 = vpop.f32.mrf.mxu1 }
 0x230   : > { %v2037_v31 = vmul.f32 %v1740_v30, %v1644_v36  ;;  %v2034_v36 = vmul.f32 %v4228_v21, %v4236_v26 }
 0x231   : > { %v1646_v11 = vpop.f32.mrf.mxu0  ;;  %v1750_v38 = vpop.f32.mrf.mxu1 }
 0x232   : > { %v2035_v11 = vmul.f32 %v4234_v24, %v4240_v29 }
 0x233   : > { %v1649_v39 = vpop.f32.mrf.mxu0  ;;  %v1753_v40 = vpop.f32.mrf.mxu1 }
 0x234   : > { %v2038_v15 = vmul.f32 %v1745_v33, %v1649_v39 }
 0x235   : > { %v1651_v41 = vpop.f32.mrf.mxu0  ;;  %v1755_v8 = vpop.f32.mrf.mxu1 }
 0x237   : > { %v1652_v42 = vpop.f32.mrf.mxu0  ;;  %v1756_v44 = vpop.f32.mrf.mxu1 }
 0x238   : > { %v2039_v19 = vmul.f32 %v1748_v37, %v1652_v42 }
 0x239   : > { %v1654_v45 = vpop.f32.mrf.mxu0  ;;  %v1758_v46 = vpop.f32.mrf.mxu1 }
 0x23b   : > { %v1657_v47 = vpop.f32.mrf.mxu0  ;;  %v1761_v49 = vpop.f32.mrf.mxu1 }
 0x23c   : > { %v2040_v17 = vmul.f32 %v1753_v40, %v1657_v47 }
 0x23d   : > { %v1659_v50 = vpop.f32.mrf.mxu0  ;;  %v1763_v51 = vpop.f32.mrf.mxu1 }
 0x23f   : > { %v1660_v52 = vpop.f32.mrf.mxu0  ;;  %v1764_v54 = vpop.f32.mrf.mxu1 }
 0x240   : > { %v2041_v10 = vmul.f32 %v1756_v44, %v1660_v52 }
 0x241   : > { %v1662_v55 = vpop.f32.mrf.mxu0  ;;  %v1766_v56 = vpop.f32.mrf.mxu1 }
 0x242   : > { %v2016_v55 = vld [vmem:[%s4802_s4] sm:$0xff]  ;;  %v2019_v56 = vld [vmem:[%s4802_s4 + $0x18] sm:$0xff] }
 0x243   : > { %v1665_v57 = vpop.f32.mrf.mxu0  ;;  %v4244_v58 = vpop.f32.mrf.mxu1 }
 0x244   : > { %v2042_v4 = vmul.f32 %v1761_v49, %v1665_v57  ;;  %v2018_v57 = vld [vmem:[%s4802_s4 + $0x10] sm:$0xff] }
 0x245   : > { %v1667_v59 = vpop.f32.mrf.mxu0  ;;  %v1771_v61 = vpop.f32.mrf.mxu1 }
 0x246   : > { %v2023_v59 = vld [vmem:[%s4802_s4 + $0x38] sm:$0xff]  ;;  %v2022_v61 = vld [vmem:[%s4802_s4 + $0x30] sm:$0xff] }
 0x247   : > { %v1668_v0 = vpop.f32.mrf.mxu0  ;;  %v4246_v53 = vpop.f32.mrf.mxu1 }
 0x248   : > { %v2043_v1 = vmul.f32 %v1764_v54, %v1668_v0  ;;  %v2025_v0 = vld [vmem:[%s4802_s4 + $0x48] sm:$0xff] }
 0x249   : > { %v1670_v43 = vpop.f32.mrf.mxu0  ;;  %v1774_v3 = vpop.f32.mrf.mxu1 }
 0x24a   : > { %2071 = vmatpush1.msra.mxu0 %v2043_v1  ;;  %v2027_v1 = vld [vmem:[%s4802_s4 + $0x58] sm:$0xff]  ;;  %v2026_v43 = vld [vmem:[%s4802_s4 + $0x50] sm:$0xff]  ;;  %v3612_v3 = vld [vmem:[%s4801_s3 + $0x184] ss:$8 sps:$4 sm:$0xff]  }
 0x24b   : > { %v4248_v5 = vpop.f32.mrf.mxu0  ;;  %2072 = vmatprep.subr.mxu0 %v3717_v60  ;;  %v4251_v7 = vpop.f32.mrf.mxu1  ;;  %3209 = vmatprep.mubr.msk.bf16.mxu1 %vm1448_vm2, %v3612_v3 }
 0x24c   : > { %2073 = vmatpush1.msra.mxu0 %v2042_v4  ;;  %v2044_v54 = vmul.f32 %v4244_v58, %v4248_v5  ;;  %v2021_v58 = vld [vmem:[%s4802_s4 + $0x28] sm:$0xff]  ;;  %v3615_v5 = vld [vmem:[%s4801_s3 + $0x194] ss:$8 sps:$4 sm:$0xff]  }
 0x24d   : > { %v1675_v48 = vpop.f32.mrf.mxu0  ;;  %2074 = vmatprep.subr.mxu0 %v3717_v60  ;;  %v1779_v12 = vpop.f32.mrf.mxu1  ;;  %v3614_v4 = vld [vmem:[%s4801_s3 + $0x180] ss:$8 sps:$4 sm:$0xff]  }
 0x24e   : > { %2075 = vmatpush1.msra.mxu0 %v2041_v10  ;;  %1800 = vmatmul.mubr.bf16.gmra.mxu1 %v3614_v4  ;;  %v3618_v10 = vld [vmem:[%s4801_s3 + $0x1a4] ss:$8 sps:$4 sm:$0xff]   ;;  %v3620_v48 = vld [vmem:[%s4801_s3 + $0x1a0] ss:$8 sps:$4 sm:$0xff]   ;;  %v3621_v12 = vld [vmem:[%s4801_s3 + $0x1b4] ss:$8 sps:$4 sm:$0xff]  }
 0x24f   : > { %v4254_v18 = vpop.f32.mrf.mxu0  ;;  %2076 = vmatprep.subr.mxu0 %v3717_v60  ;;  %v4257_v20 = vpop.f32.mrf.mxu1  ;;  %3210 = vmatprep.mubr.msk.bf16.mxu1 %vm1448_vm2, %v3615_v5 }
 0x250   : > { %2077 = vmatpush1.msra.mxu0 %v2040_v17  ;;  %v2045_v52 = vmul.f32 %v4246_v53, %v4254_v18  ;;  %v2024_v53 = vld [vmem:[%s4802_s4 + $0x40] sm:$0xff]  ;;  %v3623_v17 = vld [vmem:[%s4801_s3 + $0x1b0] ss:$8 sps:$4 sm:$0xff]  }
 0x251   : > { %v1678_v22 = vpop.f32.mrf.mxu0  ;;  %2078 = vmatprep.subr.mxu0 %v3717_v60  ;;  %v1782_v25 = vpop.f32.mrf.mxu1  ;;  %v3624_v18 = vld [vmem:[%s4801_s3 + $0x1c4] ss:$8 sps:$4 sm:$0xff]  }
 0x252   : > { %2079 = vmatpush1.msra.mxu0 %v2039_v19  ;;  %v3627_v19 = vld [vmem:[%s4801_s3 + $0x1d4] ss:$8 sps:$4 sm:$0xff]   ;;  %v3629_v22 = vld [vmem:[%s4801_s3 + $0x1d0] ss:$8 sps:$4 sm:$0xff]   ;;  %v3630_v25 = vld [vmem:[%s4801_s3 + $0x1e4] ss:$8 sps:$4 sm:$0xff]  }
 0x253   : > { %v4260_v28 = vpop.f32.mrf.mxu0  ;;  %2080 = vmatprep.subr.mxu0 %v3717_v60  ;;  %v1785_v9 = vpop.f32.mrf.mxu1 }
 0x254   : > { %2081 = vmatpush1.msra.mxu0 %v2038_v15  ;;  %v3632_v15 = vld [vmem:[%s4801_s3 + $0x1e0] ss:$8 sps:$4 sm:$0xff]  }
 0x255   : > { %v1683_v6 = vpop.f32.mrf.mxu0  ;;  %2082 = vmatprep.subr.mxu0 %v3717_v60  ;;  %v1787_v34 = vpop.f32.mrf.mxu1 }
 0x256   : > { %2083 = vmatpush1.msra.mxu0 %v2037_v31  ;;  %v3635_v31 = vld [vmem:[%s4801_s3 + $0x1f0] ss:$8 sps:$4 sm:$0xff]   ;;  %v3636_v6 = vld [vmem:[%s4801_s3 + $0x204] ss:$8 sps:$4 sm:$0xff]   ;;  %v3638_v34 = vld [vmem:[%s4801_s3 + $0x200] ss:$8 sps:$4 sm:$0xff]  }
 0x257   : > { %v1684_v37 = vpop.f32.mrf.mxu0  ;;  %2084 = vmatprep.subr.mxu0 %v3717_v60  ;;  %v1788_v33 = vpop.f32.mrf.mxu1 }
 0x258   : > { %2085 = vmatpush1.msra.mxu0 %v2036_v35  ;;  %v3639_v35 = vld [vmem:[%s4801_s3 + $0x214] ss:$8 sps:$4 sm:$0xff]  }
 0x259   : > { %v1686_v38 = vpop.f32.mrf.mxu0  ;;  %2086 = vmatprep.subr.mxu0 %v3717_v60  ;;  %v1790_v30 = vpop.f32.mrf.mxu1 }
 0x25a   : > { %2087 = vmatpush1.msra.mxu0 %v2035_v11  ;;  %v3644_v11 = vld [vmem:[%s4801_s3 + $0x220] ss:$8 sps:$4 sm:$0xff]   ;;  %v3645_v38 = vld [vmem:[%s4801_s3 + $0x234] ss:$8 sps:$4 sm:$0xff]   ;;  %v3647_v30 = vld [vmem:[%s4801_s3 + $0x230] ss:$8 sps:$4 sm:$0xff]  }
 0x25b   : > { %v1689_v39 = vpop.f32.mrf.mxu0  ;;  %2088 = vmatprep.subr.mxu0 %v3717_v60  ;;  %v1793_v27 = vpop.f32.mrf.mxu1 }
 0x25c   : > { %2089 = vmatpush1.msra.mxu0 %v2034_v36  ;;  %v2048_v51 = vmul.f32 %v1785_v9, %v1689_v39  ;;  %v3633_v9 = vld [vmem:[%s4801_s3 + $0x1f4] ss:$8 sps:$4 sm:$0xff]  }
 0x25d   : > { %v1691_v40 = vpop.f32.mrf.mxu0  ;;  %2090 = vmatprep.subr.mxu0 %v3717_v60  ;;  %v1795_v24 = vpop.f32.mrf.mxu1 }
 0x25e   : > { %2091 = vmatpush1.msra.mxu0 %v2033_v32 }
 0x25f   : > { %v1692_v29 = vpop.f32.mrf.mxu0  ;;  %2092 = vmatprep.subr.mxu0 %v3717_v60  ;;  %v1796_v41 = vpop.f32.mrf.mxu1 }
 0x260   : > { %2093 = vmatpush1.msra.mxu0 %v4230_v13  ;;  %v2049_v50 = vmul.f32 %v1788_v33, %v1692_v29  ;;  %v3642_v33 = vld [vmem:[%s4801_s3 + $0x224] ss:$8 sps:$4 sm:$0xff]  }
 0x261   : > { %v1694_v21 = vpop.f32.mrf.mxu0  ;;  %2094 = vmatprep.subr.mxu0 %v3717_v60  ;;  %v1798_v26 = vpop.f32.mrf.mxu1 }
 0x262   : > { %2095 = vmatpush1.msra.mxu0 %v4226_v14 }
 0x263   : > { %v1697_v8 = vpop.f32.mrf.mxu0  ;;  %2096 = vmatprep.subr.mxu0 %v3717_v60 }
 0x264   : > { %2097 = vmatpush1.msra.mxu0 %v4222_v62  ;;  %v2050_v62 = vmul.f32 %v1793_v27, %v1697_v8 }
 0x265   : > { %v1699_v16 = vpop.f32.mrf.mxu0  ;;  %2098 = vmatprep.subr.mxu0 %v3717_v60 }
 0x267   : > { %v1700_v23 = vpop.f32.mrf.mxu0 }
 0x268   : > { %v2051_v14 = vmul.f32 %v1796_v41, %v1700_v23 }
 0x269   : > { %v1702_v42 = vpop.f32.mrf.mxu0 }
 0x26b   : > { %v1705_v44 = vpop.f32.mrf.mxu0 }
 0x26c   : > { %v2028_v49 = vmul.f32 %v1705_v44, %v4218_v63  ;;  %v2047_v63 = vmul.f32 %v4257_v20, %v1684_v37  ;;  %v3626_v20 = vld [vmem:[%s4801_s3 + $0x1c0] ss:$8 sps:$4 sm:$0xff]   ;;  %v3641_v37 = vld [vmem:[%s4801_s3 + $0x210] ss:$8 sps:$4 sm:$0xff]  }
 0x26d   : > { %v1707_v45 = vpop.f32.mrf.mxu0 }
 0x26f   : > { %v1708_v46 = vpop.f32.mrf.mxu0 }
 0x270   : > { %v2029_v13 = vmul.f32 %v1708_v46, %v4220_v2  ;;  %v2046_v2 = vmul.f32 %v4251_v7, %v4260_v28  ;;  %v3617_v7 = vld [vmem:[%s4801_s3 + $0x190] ss:$8 sps:$4 sm:$0xff]   ;;  %v2236_v28 = vld [vmem:[%s4803_s5] sm:$0xff] }
 0x271   : > { %v1710_v47 = vpop.f32.mrf.mxu0  ;;  %1808 = vmatmul.mubr.bf16.gmra.mxu1 %v3617_v7 }
 0x272   : > { %2099 = vmatpush1.msra.mxu0 %v2029_v13  ;;  %3211 = vmatprep.mubr.msk.bf16.mxu1 %vm1448_vm2, %v3618_v10 }
 0x273   : > { %2100 = vmatprep.subr.mxu0 %v3717_v60 }
 0x274   : > { %2101 = vmatpush1.msra.mxu0 %v2028_v49 }
 0x275   : > { %2118 = vmatprep.subr.mxu0 %v3717_v60 }
 0x276   : > { %2119 = vmatpush2.msra.mxu0 %v2051_v14 }
 0x277   : > { %2120 = vmatprep.subr.mxu0 %v3717_v60 }
 0x278   : > { %2121 = vmatpush2.msra.mxu0 %v2050_v62 }
 0x279   : > { %2122 = vmatprep.subr.mxu0 %v3717_v60  ;;  %1816 = vmatmul.mubr.bf16.gmra.mxu1 %v3620_v48 }
 0x27a   : > { %2123 = vmatpush2.msra.mxu0 %v2049_v50  ;;  %3212 = vmatprep.mubr.msk.bf16.mxu1 %vm1448_vm2, %v3621_v12 }
 0x27b   : > { %2124 = vmatprep.subr.mxu0 %v3717_v60 }
 0x27c   : > { %2125 = vmatpush2.msra.mxu0 %v2048_v51 }
 0x27d   : > { %2126 = vmatprep.subr.mxu0 %v3717_v60 }
 0x27e   : > { %2127 = vmatpush2.msra.mxu0 %v2047_v63 }
 0x27f   : > { %2128 = vmatprep.subr.mxu0 %v3717_v60 }
 0x280   : > { %2129 = vmatpush2.msra.mxu0 %v2046_v2 }
 0x281   : > { %2130 = vmatprep.subr.mxu0 %v3717_v60  ;;  %1824 = vmatmul.mubr.bf16.gmra.mxu1 %v3623_v17 }
 0x282   : > { %2131 = vmatpush2.msra.mxu0 %v2045_v52  ;;  %3213 = vmatprep.mubr.msk.bf16.mxu1 %vm1448_vm2, %v3624_v18 }
 0x283   : > { %2132 = vmatprep.subr.mxu0 %v3717_v60  ;;  %v2020_v60 = vld [vmem:[%s4802_s4 + $0x20] sm:$0xff] }
 0x284   : > { %2133 = vmatpush2.msra.mxu0 %v2044_v54 }
 0x285   : > { %2135 = vmatmul.mubr.f32.vlgmr.msra.gmra.mxu0 %v2016_v55 }
 0x286   : > { %3228 = vmatprep.mubr.msk.f32.mxu0 %vm1448_vm2, %v2019_v56 }
 0x289   : > { %2140 = vmatmul.mubr.f32.gmra.mxu0 %v2018_v57  ;;  %1832 = vmatmul.mubr.bf16.gmra.mxu1 %v3626_v20 }
 0x28a   : > { %3229 = vmatprep.mubr.msk.f32.mxu0 %vm1448_vm2, %v2021_v58  ;;  %3214 = vmatprep.mubr.msk.bf16.mxu1 %vm1448_vm2, %v3627_v19 }
 0x28d   : > { %2145 = vmatmul.mubr.f32.gmra.mxu0 %v2020_v60 }
 0x28e   : > { %3230 = vmatprep.mubr.msk.f32.mxu0 %vm1448_vm2, %v2023_v59 }
 0x291   : > { %2150 = vmatmul.mubr.f32.gmra.mxu0 %v2022_v61  ;;  %1840 = vmatmul.mubr.bf16.gmra.mxu1 %v3629_v22 }
 0x292   : > { %3231 = vmatprep.mubr.msk.f32.mxu0 %vm1448_vm2, %v2025_v0  ;;  %3215 = vmatprep.mubr.msk.bf16.mxu1 %vm1448_vm2, %v3630_v25 }
 0x295   : > { %2155 = vmatmul.mubr.f32.gmra.mxu0 %v2024_v53 }
 0x296   : > { %3232 = vmatprep.mubr.msk.f32.mxu0 %vm1448_vm2, %v2027_v1 }
 0x299   : > { %2160 = vmatmul.mubr.f32.gmra.mxu0 %v2026_v43  ;;  %1848 = vmatmul.mubr.bf16.gmra.mxu1 %v3632_v15 }
 0x29a   : > { %3391 = vmatprep.mubr.msk.f32.mxu0 %vm2260_vm12, %v2236_v28  ;;  %3216 = vmatprep.mubr.msk.bf16.mxu1 %vm1448_vm2, %v3633_v9 }
 0x2a1   : > { %1856 = vmatmul.mubr.bf16.gmra.mxu1 %v3635_v31 }
 0x2a2   : > { %3217 = vmatprep.mubr.msk.bf16.mxu1 %vm1448_vm2, %v3636_v6 }
 0x2a9   : > { %1864 = vmatmul.mubr.bf16.gmra.mxu1 %v3638_v34 }
 0x2aa   : > { %3218 = vmatprep.mubr.msk.bf16.mxu1 %vm1448_vm2, %v3639_v35 }
 0x2b1   : > { %1872 = vmatmul.mubr.bf16.gmra.mxu1 %v3641_v37 }
 0x2b2   : > { %3219 = vmatprep.mubr.msk.bf16.mxu1 %vm1448_vm2, %v3642_v33 }
 0x2b9   : > { %1880 = vmatmul.mubr.bf16.gmra.mxu1 %v3644_v11 }
 0x2ba   : > { %3220 = vmatprep.mubr.msk.bf16.mxu1 %vm1448_vm2, %v3645_v38 }
 0x2c1   : > { %1888 = vmatmul.mubr.bf16.gmra.mxu1 %v3647_v30 }
 0x345   : > { %v2136_v36 = vpop.f32.mrf.mxu0 }
 0x346   : > { %v2165_v41 = vmul.f32 %v2136_v36, %v2136_v36  ;;  %v2197_v8 = vmul.f32 0.35355338, %v2136_v36 }
 0x347   : > { %v2138_v39 = vpop.f32.mrf.mxu0 }
 0x349   : > { %v2141_v27 = vpop.f32.mrf.mxu0 }
 0x34a   : > { %v2166_v45 = vmul.f32 %v2141_v27, %v2141_v27  ;;  %v2198_v47 = vmul.f32 0.35355338, %v2141_v27 }
 0x34b   : > { %v2143_v32 = vpop.f32.mrf.mxu0 }
 0x34d   : > { %v2146_v40 = vpop.f32.mrf.mxu0 }
 0x34e   : > { %v2167_v51 = vmul.f32 %v2146_v40, %v2146_v40  ;;  %v2199_v54 = vmul.f32 0.35355338, %v2146_v40 }
 0x34f   : > { %v2148_v24 = vpop.f32.mrf.mxu0 }
 0x351   : > { %v2151_v29 = vpop.f32.mrf.mxu0 }
 0x352   : > { %v2168_v21 = vmul.f32 %v2151_v29, %v2151_v29  ;;  %v2200_v26 = vmul.f32 0.35355338, %v2151_v29 }
 0x353   : > { %v2153_v16 = vpop.f32.mrf.mxu0 }
 0x354   : > { %v2171_v23 = vadd.f32 %v2168_v21, %v2165_v41  ;;  %v2203_v42 = vmax.f32 %v2197_v8, %v2200_v26 }
 0x355   : > { %v2156_v44 = vpop.f32.mrf.mxu0 }
 0x356   : > { %v2174_v46 = vrot.slane %v2171_v23, 4  ;;  %v2169_v13 = vmul.f32 %v2156_v44, %v2156_v44  ;;  %v2201_v49 = vmul.f32 0.35355338, %v2156_v44  ;;  %v2206_v63 = vsub.f32 %v2197_v8, %v2203_v42 }
 0x357   : > { %v2158_v14 = vpop.f32.mrf.mxu0  ;;  %v2215_v55 = vsub.f32 %v2200_v26, %v2203_v42 }
 0x358   : > { %v2175_v62 = vadd.f32 %v2174_v46, %v2171_v23  ;;  %v2172_v50 = vadd.f32 %v2169_v13, %v2166_v45  ;;  %v2204_v2 = vmax.f32 %v2198_v47, %v2201_v49  ;;  %v2209_v43 = vmul.f32 1.442695, %v2206_v63  ;;  %v2237_v46 = vld [vmem:[%s4803_s5 + $0x8] sm:$0xff]  ;;  %v2238_v13 = vld [vmem:[%s4803_s5 + $0x10] sm:$0xff]  ;;  %v2244_v63 = vld [vmem:[%s4803_s5 + $0x40] sm:$0xff] }
 0x359   : > { %v2161_v52 = vpop.f32.mrf.mxu0  ;;  %v2218_v7 = vmul.f32 1.442695, %v2215_v55  ;;  %v2241_v14 = vld [vmem:[%s4803_s5 + $0x28] sm:$0xff]  ;;  %v2246_v55 = vld [vmem:[%s4803_s5 + $0x50] sm:$0xff] }
 0x35a   : > { %v2180_v56 = vrot.slane %v2172_v50, 4  ;;  %v2170_v57 = vmul.f32 %v2161_v52, %v2161_v52  ;;  %v2176_v58 = vrot.slane %v2175_v62, 2  ;;  %v2207_v60 = vsub.f32 %v2198_v47, %v2204_v2  ;;  %v2239_v47 = vld [vmem:[%s4803_s5 + $0x18] sm:$0xff] }
 0x35b   : > { %v2216_v59 = vsub.f32 %v2201_v49, %v2204_v2  ;;  %v2202_v61 = vmul.f32 0.35355338, %v2161_v52  ;;  %v2163_v0 = vpop.f32.mrf.mxu0  ;;  %v2240_v49 = vld [vmem:[%s4803_s5 + $0x20] sm:$0xff]  ;;  %v2245_v52 = vld [vmem:[%s4803_s5 + $0x48] sm:$0xff] }
 0x35c   : > { %v2181_v53 = vadd.f32 %v2180_v56, %v2172_v50  ;;  %v2173_v1 = vadd.f32 %v2170_v57, %v2167_v51  ;;  %v2211_v3 = vmul.f32 1.442695, %v2207_v60  ;;  %v2177_v12 = vadd.f32 %v2176_v58, %v2175_v62  ;;  %v2242_v62 = vld [vmem:[%s4803_s5 + $0x30] sm:$0xff]  ;;  %v2243_v50 = vld [vmem:[%s4803_s5 + $0x38] sm:$0xff]  ;;  %v4461_v51 = vpop.f32.mrf.mxu1  ;;  %v2248_v60 = vld [vmem:[%s4803_s5 + $0x60] sm:$0xff] }
 0x35d   : > { %v2220_v4 = vmul.f32 1.442695, %v2216_v59  ;;  %v2205_v5 = vmax.f32 %v2199_v54, %v2202_v61  ;;  %v2247_v57 = vld [vmem:[%s4803_s5 + $0x58] sm:$0xff] }
 0x35e   : > { %v2182_v10 = vrot.slane %v2181_v53, 2  ;;  %v2186_v48 = vrot.slane %v2173_v1, 4  ;;  %3674 = vpow2.f32 %v2211_v3  ;;  %v2178_v9 = vrot.slane %v2177_v12, 1  ;;  %v1803_v2 = vpop.f32.mrf.mxu1 }
 0x35f   : > { %v2208_v17 = vsub.f32 %v2199_v54, %v2205_v5  ;;  %v2217_v18 = vsub.f32 %v2202_v61, %v2205_v5  ;;  %3676 = vpow2.f32 %v2220_v4  ;;  %v2249_v61 = vld [vmem:[%s4803_s5 + $0x68] sm:$0xff]  ;;  %v2252_v4 = vld [vmem:[%s4803_s5 + $0x80] sm:$0xff] }
 0x360   : > { %v2183_v20 = vadd.f32 %v2182_v10, %v2181_v53  ;;  %v2187_v19 = vadd.f32 %v2186_v48, %v2173_v1  ;;  %3678 = vpow2.f32 %v2209_v43  ;;  %v2179_v35 = vadd.f32 %v2178_v9, %v2177_v12  ;;  %v4471_v54 = vpop.f32.mrf.mxu1  ;;  %v2250_v53 = vld [vmem:[%s4803_s5 + $0x70] sm:$0xff]  ;;  %v2251_v43 = vld [vmem:[%s4803_s5 + $0x78] sm:$0xff]  ;;  %v3650_v2 = vld [vmem:[%s4801_s3 + $0x240] ss:$8 sps:$4 sm:$0xff]  }
 0x361   : > { %v2213_v22 = vmul.f32 1.442695, %v2208_v17  ;;  %v2222_v25 = vmul.f32 1.442695, %v2217_v18  ;;  %3680 = vpow2.f32 %v2218_v7  ;;  %v2253_v7 = vld [vmem:[%s4803_s5 + $0x88] sm:$0xff]  ;;  %v2254_v48 = vld [vmem:[%s4803_s5 + $0x90] sm:$0xff] }
 0x362   : > { %v2184_v15 = vrot.slane %v2183_v20, 1  ;;  %v2188_v28 = vrot.slane %v2187_v19, 2  ;;  %v1806_v56 = vpop.f32.mrf.mxu1  ;;  %v2255_v17 = vld [vmem:[%s4803_s5 + $0x98] sm:$0xff]  ;;  %vm1945_vm0 = vcmp.gt.f32.partialorder %v4471_v54, 0.0 }
 0x363   : > { %3682 = vpow2.f32 %v2213_v22  ;;  %v2257_v22 = vld [vmem:[%s4803_s5 + $0xa8] sm:$0xff]  ;;  %v2259_v9 = vld [vmem:[%s4803_s5 + $0xb8] sm:$0xff] }
 0x364   : > { %v2189_v31 = vadd.f32 %v2188_v28, %v2187_v19  ;;  %3684 = vpow2.f32 %v2222_v25  ;;  %v2185_v6 = vadd.f32 %v2184_v15, %v2183_v20  ;;  %v4481_v58 = vpop.f32.mrf.mxu1  ;;  %v2256_v20 = vld [vmem:[%s4803_s5 + $0xa0] sm:$0xff]  ;;  %v2258_v15 = vld [vmem:[%s4803_s5 + $0xb0] sm:$0xff] }
 0x365   : > { %v3654_v56 = vld [vmem:[%s4801_s3 + $0x264] ss:$8 sps:$4 sm:$0xff]   ;;  %vm1946_vm1 = vcmp.gt.f32.partialorder %v4481_v58, 0.0 }
 0x366   : > { %v2190_v34 = vrot.slane %v2189_v31, 1  ;;  %v2193_v33 = vsel %vm2192_vm13, %v2179_v35, %v2185_v6  ;;  %v1811_v59 = vpop.f32.mrf.mxu1 }
 0x367   : > { %v3660_v59 = vld [vmem:[%s4801_s3 + $0x270] ss:$8 sps:$4 sm:$0xff]  }
 0x368   : > { %v2191_v37 = vadd.f32 %v2190_v34, %v2189_v31  ;;  %v4491_v0 = vpop.f32.mrf.mxu1 }
 0x369   : > { %vm1947_vm3 = vcmp.gt.f32.partialorder %v4491_v0, 0.0 }
 0x36a   : > { %v2195_v11 = vsel %vm2194_vm14, %v2193_v33, %v2191_v37  ;;  %v1814_v1 = vpop.f32.mrf.mxu1 }
 0x36b   : > { %2196 = vst [vmem:[%s466_s22] sm:$0x7] %v2195_v11  ;;  %v3675_v38 = vpop.eup %3674  ;;  %v3665_v1 = vld [vmem:[%s4801_s3 + $0x280] ss:$8 sps:$4 sm:$0xff]  }
 0x36c   : > { %v3677_v30 = vpop.eup %3676  ;;  %v4501_v3 = vpop.f32.mrf.mxu1 }
 0x36d   : > { %v3679_v36 = vpop.eup %3678  ;;  %v2225_v27 = vadd.f32 %v3677_v30, %v3675_v38  ;;  %vm1948_vm6 = vcmp.gt.f32.partialorder %v4501_v3, 0.0 }
 0x36e   : > { %v3681_v39 = vpop.eup %3680  ;;  %v1819_v5 = vpop.f32.mrf.mxu1 }
 0x36f   : > { %v2224_v29 = vadd.f32 %v3681_v39, %v3679_v36  ;;  %3686 = vrcp.f32 %v2225_v27  ;;  %v1969_v5 = vmul.f32 0.01, %v4471_v54 }
 0x370   : > { %v3683_v32 = vpop.eup %3682  ;;  %v4511_v10 = vpop.f32.mrf.mxu1 }
 0x371   : > { %v3685_v40 = vpop.eup %3684  ;;  %vm1949_vm4 = vcmp.gt.f32.partialorder %v4511_v10, 0.0 }
 0x372   : > { %v2226_v24 = vadd.f32 %v3685_v40, %v3683_v32  ;;  %v1822_v12 = vpop.f32.mrf.mxu1 }
 0x374   : > { %3688 = vrcp.f32 %v2226_v24  ;;  %v4521_v18 = vpop.f32.mrf.mxu1 }
 0x375   : > { %3690 = vrcp.f32 %v2224_v29  ;;  %vm1950_vm10 = vcmp.gt.f32.partialorder %v4521_v18, 0.0 }
 0x376   : > { %v1827_v19 = vpop.f32.mrf.mxu1 }
 0x378   : > { %v4531_v25 = vpop.f32.mrf.mxu1 }
 0x379   : > { %vm1951_vm8 = vcmp.gt.f32.partialorder %v4531_v25, 0.0 }
 0x37a   : > { %v1830_v28 = vpop.f32.mrf.mxu1 }
 0x37c   : > { %v3687_v41 = vpop.eup %3686  ;;  %v4541_v31 = vpop.f32.mrf.mxu1 }
 0x37d   : > { %v2234_v16 = vmul.f32 %v3687_v41, %v3677_v30  ;;  %v2231_v44 = vmul.f32 %v3687_v41, %v3675_v38 }
 0x37e   : > { %v1835_v6 = vpop.f32.mrf.mxu1 }
 0x380   : > { %v4544_v34 = vpop.f32.mrf.mxu1 }
 0x381   : > { %v3689_v21 = vpop.eup %3688 }
 0x382   : > { %v2235_v26 = vmul.f32 %v3689_v21, %v3685_v40  ;;  %v3691_v8 = vpop.eup %3690  ;;  %v2232_v42 = vmul.f32 %v3689_v21, %v3683_v32  ;;  %v1838_v35 = vpop.f32.mrf.mxu1 }
 0x383   : > { %v2233_v23 = vmul.f32 %v3691_v8, %v3681_v39  ;;  %v2230_v45 = vmul.f32 %v3691_v8, %v3679_v36 }
 0x384   : > { %3379 = vmatprep.subr.mxu0 %v2235_v26  ;;  %v4546_v37 = vpop.f32.mrf.mxu1 }
 0x385   : > { %3380 = vmatpush3.msra.mxu0 %v2235_v26 }
 0x386   : > { %3381 = vmatprep.subr.mxu0 %v2234_v16  ;;  %v1843_v33 = vpop.f32.mrf.mxu1 }
 0x387   : > { %3382 = vmatpush3.msra.mxu0 %v2234_v16  ;;  %v1970_v33 = vmul.f32 0.01, %v4481_v58 }
 0x388   : > { %3383 = vmatprep.subr.mxu0 %v2233_v23  ;;  %v4548_v11 = vpop.f32.mrf.mxu1 }
 0x389   : > { %3384 = vmatpush3.msra.mxu0 %v2233_v23 }
 0x38a   : > { %3385 = vmatprep.subr.mxu0 %v2232_v42  ;;  %v1846_v38 = vpop.f32.mrf.mxu1 }
 0x38b   : > { %3386 = vmatpush3.msra.mxu0 %v2232_v42  ;;  %v1971_v38 = vmul.f32 0.01, %v4491_v0 }
 0x38c   : > { %3387 = vmatprep.subr.mxu0 %v2231_v44  ;;  %v4550_v30 = vpop.f32.mrf.mxu1 }
 0x38d   : > { %3388 = vmatpush3.msra.mxu0 %v2231_v44  ;;  %vm1956_vm7 = vcmp.gt.f32.partialorder %v4550_v30, 0.0 }
 0x38e   : > { %3389 = vmatprep.subr.mxu0 %v2230_v45  ;;  %v1851_v36 = vpop.f32.mrf.mxu1 }
 0x38f   : > { %3390 = vmatpush3.msra.mxu0 %v2230_v45  ;;  %v1973_v36 = vmul.f32 0.01, %v4511_v10 }
 0x390   : > { %3392 = vmatmul.mubr.msk.f32.vlgmr.msra.gmra.mxu0 %vm2260_vm12, %v2237_v46  ;;  %v4552_v39 = vpop.f32.mrf.mxu1 }
 0x391   : > { %3394 = vmatprep.mubr.msk.f32.mxu0 %vm2260_vm12, %v2238_v13  ;;  %vm1957_vm5 = vcmp.gt.f32.partialorder %v4552_v39, 0.0 }
 0x392   : > { %v1854_v27 = vpop.f32.mrf.mxu1 }
 0x393   : > { %v1981_v27 = vmul.f32 0.01, %v4552_v39 }
 0x394   : > { %3395 = vmatmul.mubr.msk.f32.gmra.mxu0 %vm2260_vm12, %v2239_v47  ;;  %v4554_v32 = vpop.f32.mrf.mxu1 }
 0x395   : > { %3397 = vmatprep.mubr.msk.f32.mxu0 %vm2260_vm12, %v2240_v49  ;;  %vm1958_vm11 = vcmp.gt.f32.partialorder %v4554_v32, 0.0 }
 0x396   : > { %v1859_v40 = vpop.f32.mrf.mxu1 }
 0x398   : > { %3398 = vmatmul.mubr.msk.f32.gmra.mxu0 %vm2260_vm12, %v2241_v14  ;;  %v4556_v24 = vpop.f32.mrf.mxu1 }
 0x399   : > { %3400 = vmatprep.mubr.msk.f32.mxu0 %vm2260_vm12, %v2242_v62  ;;  %vm1959_vm9 = vcmp.gt.f32.partialorder %v4556_v24, 0.0 }
 0x39a   : > { %v1862_v29 = vpop.f32.mrf.mxu1 }
 0x39b   : > { %v1972_v29 = vmul.f32 0.01, %v4501_v3 }
 0x39c   : > { %3401 = vmatmul.mubr.msk.f32.gmra.mxu0 %vm2260_vm12, %v2243_v50  ;;  %v4558_v41 = vpop.f32.mrf.mxu1 }
 0x39d   : > { %3403 = vmatprep.mubr.msk.f32.mxu0 %vm2260_vm12, %v2244_v63  ;;  %v3648_v63 = vld [vmem:[%s4801_s3 + $0x244] ss:$8 sps:$4 sm:$0xff]   ;;  %vm1960_vm14 = vcmp.gt.f32.partialorder %v4558_v41, 0.0 }
 0x39e   : > { %v1867_v21 = vpop.f32.mrf.mxu1  ;;  %3221 = vmatprep.mubr.msk.bf16.mxu1 %vm1448_vm2, %v3648_v63  ;;  %v2005_v63 = vsel %vm1957_vm5, %v4552_v39, %v1981_v27 }
 0x39f   : > { %1896 = vmatmul.mubr.bf16.gmra.mxu1 %v3650_v2  ;;  %v1980_v21 = vmul.f32 0.01, %v4550_v30 }
 0x3a0   : > { %3404 = vmatmul.mubr.msk.f32.gmra.mxu0 %vm2260_vm12, %v2245_v52  ;;  %v4560_v26 = vpop.f32.mrf.mxu1  ;;  %v3651_v52 = vld [vmem:[%s4801_s3 + $0x254] ss:$8 sps:$4 sm:$0xff]  }
 0x3a1   : > { %3406 = vmatprep.mubr.msk.f32.mxu0 %vm2260_vm12, %v2246_v55  ;;  %v3653_v55 = vld [vmem:[%s4801_s3 + $0x250] ss:$8 sps:$4 sm:$0xff]   ;;  %3222 = vmatprep.mubr.msk.bf16.mxu1 %vm1448_vm2, %v3651_v52  ;;  %v1996_v52 = vsel %vm1948_vm6, %v4501_v3, %v1972_v29  ;;  %vm1961_vm13 = vcmp.gt.f32.partialorder %v4560_v26, 0.0  ;;  %vm1955_vm6 = vcmp.gt.f32.partialorder %v4548_v11, 0.0 }
 0x3a2   : > { %v1870_v8 = vpop.f32.mrf.mxu1 }
 0x3a4   : > { %3407 = vmatmul.mubr.msk.f32.gmra.mxu0 %vm2260_vm12, %v2247_v57  ;;  %v4562_v16 = vpop.f32.mrf.mxu1  ;;  %v3656_v57 = vld [vmem:[%s4801_s3 + $0x260] ss:$8 sps:$4 sm:$0xff]  }
 0x3a5   : > { %3409 = vmatprep.mubr.msk.f32.mxu0 %vm2260_vm12, %v2248_v60  ;;  %v3657_v60 = vld [vmem:[%s4801_s3 + $0x274] ss:$8 sps:$4 sm:$0xff]   ;;  %v1986_v27 = vmul.f32 0.01, %v4562_v16 }
 0x3a6   : > { %v1875_v23 = vpop.f32.mrf.mxu1 }
 0x3a7   : > { %1904 = vmatmul.mubr.bf16.gmra.mxu1 %v3653_v55 }
 0x3a8   : > { %3410 = vmatmul.mubr.msk.f32.gmra.mxu0 %vm2260_vm12, %v2249_v61  ;;  %v4564_v42 = vpop.f32.mrf.mxu1  ;;  %3223 = vmatprep.mubr.msk.bf16.mxu1 %vm1448_vm2, %v3654_v56  ;;  %v3659_v61 = vld [vmem:[%s4804_s6] sm:$0xff]  }
 0x3a9   : > { %3412 = vmatprep.mubr.msk.f32.mxu0 %vm2260_vm12, %v2250_v53  ;;  %v3662_v53 = vld [vmem:[%s4801_s3 + $0x284] ss:$8 sps:$4 sm:$0xff]  }
 0x3aa   : > { %v1878_v44 = vpop.f32.mrf.mxu1 }
 0x3ab   : > { %v1995_v44 = vsel %vm1947_vm3, %v4491_v0, %v1971_v38  ;;  %v1982_v0 = vmul.f32 0.01, %v4554_v32 }
 0x3ac   : > { %3413 = vmatmul.mubr.msk.f32.gmra.mxu0 %vm2260_vm12, %v2251_v43  ;;  %v4566_v45 = vpop.f32.mrf.mxu1  ;;  %v3667_v43 = vld [vmem:[%s4801_s3 + $0x294] ss:$8 sps:$4 sm:$0xff]  }
 0x3ad   : > { %3415 = vmatprep.mubr.msk.f32.mxu0 %vm2260_vm12, %v2252_v4  ;;  %v3670_v4 = vld [vmem:[%s4801_s3 + $0x290] ss:$8 sps:$4 sm:$0xff]   ;;  %vm1964_vm5 = vcmp.gt.f32.partialorder %v4566_v45, 0.0 }
 0x3ae   : > { %v1883_v46 = vpop.f32.mrf.mxu1 }
 0x3af   : > { %1912 = vmatmul.mubr.bf16.gmra.mxu1 %v3656_v57  ;;  %v1994_v46 = vsel %vm1946_vm1, %v4481_v58, %v1970_v33  ;;  %v1974_v58 = vmul.f32 0.01, %v4521_v18  ;;  %vm1962_vm1 = vcmp.gt.f32.partialorder %v4562_v16, 0.0 }
 0x3b0   : > { %3416 = vmatmul.mubr.msk.f32.gmra.mxu0 %vm2260_vm12, %v2253_v7  ;;  %v4568_v13 = vpop.f32.mrf.mxu1  ;;  %3224 = vmatprep.mubr.msk.bf16.mxu1 %vm1448_vm2, %v3657_v60  ;;  %v1993_v7 = vsel %vm1945_vm0, %v4471_v54, %v1969_v5  ;;  %v1968_v54 = vmul.f32 0.01, %v4461_v51  ;;  %v1985_v60 = vmul.f32 0.01, %v4560_v26  ;;  %v2006_v5 = vsel %vm1958_vm11, %v4554_v32, %v1982_v0 }
 0x3b1   : > { %3418 = vmatprep.mubr.msk.f32.mxu0 %vm2260_vm12, %v2254_v48  ;;  %vm1953_vm0 = vcmp.gt.f32.partialorder %v4544_v34, 0.0  ;;  %vm1965_vm3 = vcmp.gt.f32.partialorder %v4568_v13, 0.0 }
 0x3b2   : > { %v1886_v47 = vpop.f32.mrf.mxu1 }
 0x3b3   : > { %v1975_v47 = vmul.f32 0.01, %v4531_v25 }
 0x3b4   : > { %3419 = vmatmul.mubr.msk.f32.gmra.mxu0 %vm2260_vm12, %v2255_v17  ;;  %v4570_v49 = vpop.f32.mrf.mxu1 }
 0x3b5   : > { %3421 = vmatprep.mubr.msk.f32.mxu0 %vm2260_vm12, %v2256_v20  ;;  %v1999_v3 = vsel %vm1951_vm8, %v4531_v25, %v1975_v47  ;;  %v1989_v47 = vmul.f32 0.01, %v4568_v13  ;;  %vm1966_vm8 = vcmp.gt.f32.partialorder %v4570_v49, 0.0 }
 0x3b6   : > { %v1891_v14 = vpop.f32.mrf.mxu1 }
 0x3b7   : > { %1920 = vmatmul.mubr.bf16.gmra.mxu1 %v3660_v59  ;;  %v1997_v14 = vsel %vm1949_vm4, %v4511_v10, %v1973_v36  ;;  %v2004_v10 = vsel %vm1956_vm7, %v4550_v30, %v1980_v21  ;;  %vm1954_vm4 = vcmp.gt.f32.partialorder %v4546_v37, 0.0  ;;  %v2013_v0 = vsel %vm1965_vm3, %v4568_v13, %v1989_v47 }
 0x3b8   : > { %3422 = vmatmul.mubr.msk.f32.gmra.mxu0 %vm2260_vm12, %v2257_v22  ;;  %v4572_v62 = vpop.f32.mrf.mxu1  ;;  %3225 = vmatprep.mubr.msk.bf16.mxu1 %vm1448_vm2, %v3662_v53 }
 0x3b9   : > { %3424 = vmatprep.mubr.msk.f32.mxu0 %vm2260_vm12, %v2258_v15  ;;  %vm1967_vm7 = vcmp.gt.f32.partialorder %v4572_v62, 0.0 }
 0x3ba   : > { %v1894_v50 = vpop.f32.mrf.mxu1 }
 0x3bb   : > { %v1983_v50 = vmul.f32 0.01, %v4556_v24 }
 0x3bc   : > { %3425 = vmatmul.mubr.msk.f32.gmra.mxu0 %vm2260_vm12, %v2259_v9  ;;  %vm1952_vm12 = vcmp.gt.f32.partialorder %v4541_v31, 0.0 }
 0x3bd   : > { %3439 = vmatprep.mubr.msk.bf16.mxu0 %vm2602_vm15, %v3659_v61  ;;  %v2007_v59 = vsel %vm1959_vm9, %v4556_v24, %v1983_v50  ;;  %v1977_v24 = vmul.f32 0.01, %v4544_v34 }
 0x3bf   : > { %1928 = vmatmul.mubr.bf16.gmra.mxu1 %v3665_v1 }
 0x3c0   : > { %3226 = vmatprep.mubr.msk.bf16.mxu1 %vm1448_vm2, %v3667_v43  ;;  %vm1944_vm2 = vcmp.gt.f32.partialorder %v4461_v51, 0.0  ;;  %v1976_v43 = vmul.f32 0.01, %v4541_v31 }
 0x3c1   : > { %v1992_v23 = vsel %vm1944_vm2, %v4461_v51, %v1968_v54  ;;  %v2009_v54 = vsel %vm1961_vm13, %v4560_v26, %v1985_v60  ;;  %vm1963_vm2 = vcmp.gt.f32.partialorder %v4564_v42, 0.0 }
 0x3c7   : > { %1936 = vmatmul.mubr.bf16.gmra.mxu1 %v3670_v4  ;;  %v1984_v4 = vmul.f32 0.01, %v4558_v41 }
 0x3c9   : > { %v2008_v29 = vsel %vm1960_vm14, %v4558_v41, %v1984_v4 }
 0x450   : > { %v3393_v48 = vpop.f32.mrf.mxu0 }
 0x451   : > { %v2519_v12 = vmul.f32 %v3393_v48, %v1993_v7 }
 0x452   : > { %v2399_v17 = vpop.f32.mrf.mxu0 }
 0x453   : > { %v2518_v39 = vmul.f32 %v2399_v17, %v1992_v23 }
 0x454   : > { %v3396_v20 = vpop.f32.mrf.mxu0 }
 0x455   : > { %v2521_v53 = vmul.f32 %v3396_v20, %v1995_v44  ;;  %v1987_v20 = vmul.f32 0.01, %v4564_v42 }
 0x456   : > { %v2409_v19 = vpop.f32.mrf.mxu0 }
 0x457   : > { %v2520_v25 = vmul.f32 %v2409_v19, %v1994_v46  ;;  %v1998_v19 = vsel %vm1950_vm10, %v4521_v18, %v1974_v58  ;;  %v2001_v46 = vsel %vm1953_vm0, %v4544_v34, %v1977_v24  ;;  %v2000_v18 = vsel %vm1952_vm12, %v4541_v31, %v1976_v43 }
 0x458   : > { %v4623_v22 = vpop.f32.mrf.mxu0  ;;  %v1988_v34 = vmul.f32 0.01, %v4566_v45  ;;  %v2010_v31 = vsel %vm1962_vm1, %v4562_v16, %v1986_v27  ;;  %v1979_v58 = vmul.f32 0.01, %v4548_v11  ;;  %v1978_v16 = vmul.f32 0.01, %v4546_v37 }
 0x459   : > { %v2523_v38 = vmul.f32 %v4623_v22, %v1997_v14  ;;  %v2011_v14 = vsel %vm1963_vm2, %v4564_v42, %v1987_v20 }
 0x45a   : > { %v4625_v15 = vpop.f32.mrf.mxu0 }
 0x45b   : > { %v2522_v21 = vmul.f32 %v4625_v15, %v1996_v52 }
 0x45c   : > { %v4627_v28 = vpop.f32.mrf.mxu0 }
 0x45d   : > { %v2525_v41 = vmul.f32 %v4627_v28, %v1999_v3  ;;  %v2012_v3 = vsel %vm1964_vm5, %v4566_v45, %v1988_v34  ;;  %v2002_v45 = vsel %vm1954_vm4, %v4546_v37, %v1978_v16  ;;  %v3661_v37 = vld [vmem:[%s4804_s6 + $0x8] sm:$0xff]  }
 0x45e   : > { %v4629_v9 = vpop.f32.mrf.mxu0 }
 0x45f   : > { %v2524_v42 = vmul.f32 %v4629_v9, %v1998_v19  ;;  %v1990_v9 = vmul.f32 0.01, %v4570_v49 }
 0x460   : > { %v4631_v6 = vpop.f32.mrf.mxu0 }
 0x462   : > { %v4634_v35 = vpop.f32.mrf.mxu0 }
 0x463   : > { %v2526_v60 = vmul.f32 %v4634_v35, %v2000_v18  ;;  %v2014_v35 = vsel %vm1966_vm8, %v4570_v49, %v1990_v9  ;;  %v3664_v49 = vld [vmem:[%s4804_s6 + $0x10] sm:$0xff]  }
 0x464   : > { %v4643_v40 = vpop.f32.mrf.mxu0 }
 0x466   : > { %v4650_v8 = vpop.f32.mrf.mxu0 }
 0x468   : > { %v3411_v2 = vpop.f32.mrf.mxu0 }
 0x469   : > { %v2531_v51 = vmul.f32 %v3411_v2, %v2005_v63 }
 0x46a   : > { %v2459_v55 = vpop.f32.mrf.mxu0 }
 0x46b   : > { %v2543_v56 = vadd.f32 %v2531_v51, %v2519_v12  ;;  %v2530_v57 = vmul.f32 %v2459_v55, %v2004_v10  ;;  %v1991_v55 = vmul.f32 0.01, %v4572_v62 }
 0x46c   : > { %v3414_v61 = vpop.f32.mrf.mxu0 }
 0x46d   : > { %v2542_v1 = vadd.f32 %v2530_v57, %v2518_v39  ;;  %v2533_v30 = vmul.f32 %v3414_v61, %v2007_v59  ;;  %v2527_v39 = vmul.f32 %v4631_v6, %v2001_v46 }
 0x46e   : > { %v2469_v7 = vpop.f32.mrf.mxu0 }
 0x46f   : > { %v2545_v48 = vadd.f32 %v2533_v30, %v2521_v53  ;;  %v2532_v12 = vmul.f32 %v2469_v7, %v2006_v5  ;;  %v4681_v17 = vpack.c.bf16 %v2543_v56, %v2542_v1  ;;  %v2003_v53 = vsel %vm1955_vm6, %v4548_v11, %v1979_v58  ;;  %v2779_v58 = vpop.permute.xlu0 %2778 }
 0x470   : > { %v3417_v33 = vpop.f32.mrf.mxu0  ;;  %v2015_v1 = vsel %vm1967_vm7, %v4572_v62, %v1991_v55  ;;  %v2529_v43 = vmul.f32 %v4643_v40, %v2003_v53  ;;  %v3666_v62 = vld [vmem:[%s4804_s6 + $0x18] sm:$0xff]   ;;  %v3669_v40 = vld [vmem:[%s4804_s6 + $0x20] sm:$0xff]  }
 0x471   : > { %v2544_v32 = vadd.f32 %v2532_v12, %v2520_v25  ;;  %v2535_v36 = vmul.f32 %v3417_v33, %v2009_v54  ;;  %v2528_v25 = vmul.f32 %v4650_v8, %v2002_v45  ;;  %v3671_v8 = vld [vmem:[%s4804_s6 + $0x28] sm:$0xff]  }
 0x472   : > { %v2479_v26 = vpop.f32.mrf.mxu0 }
 0x473   : > { %v2547_v22 = vadd.f32 %v2535_v36, %v2523_v38  ;;  %v2534_v23 = vmul.f32 %v2479_v26, %v2008_v29  ;;  %v2567_v44 = vpack.c.bf16 %v2545_v48, %v2544_v32 }
 0x474   : > { %v3420_v50 = vpop.f32.mrf.mxu0 }
 0x475   : > { %v2546_v15 = vadd.f32 %v2534_v23, %v2522_v21  ;;  %v2537_v63 = vmul.f32 %v3420_v50, %v2011_v14 }
 0x476   : > { %v2489_v2 = vpop.f32.mrf.mxu0 }
 0x477   : > { %v2549_v52 = vadd.f32 %v2537_v63, %v2525_v41  ;;  %v2536_v51 = vmul.f32 %v2489_v2, %v2010_v31  ;;  %v2568_v28 = vpack.c.bf16 %v2547_v22, %v2546_v15  ;;  %v3672_v2 = vld [vmem:[%s4806_s8] sm:$0xff]  }
 0x478   : > { %v3423_v10 = vpop.f32.mrf.mxu0 }
 0x479   : > { %v2548_v56 = vadd.f32 %v2536_v51, %v2524_v42  ;;  %v2539_v57 = vmul.f32 %v3423_v10, %v2013_v0  ;;  %v2784_v51 = vpop.permute.xlu1 %2783 }
 0x47a   : > { %v2499_v13 = vpop.f32.mrf.mxu0 }
 0x47b   : > { %v2551_v59 = vadd.f32 %v2539_v57, %v2527_v39  ;;  %v2538_v61 = vmul.f32 %v2499_v13, %v2012_v3  ;;  %v2569_v6 = vpack.c.bf16 %v2549_v52, %v2548_v56  ;;  %v2769_v56 = vpop.permute.xlu0 %2768 }
 0x47c   : > { %v3426_v30 = vpop.f32.mrf.mxu0 }
 0x47d   : > { %v2550_v4 = vadd.f32 %v2538_v61, %v2526_v60  ;;  %v2541_v5 = vmul.f32 %v3426_v30, %v2015_v1  ;;  %v2774_v55 = vpop.permute.xlu1 %2773 }
 0x47e   : > { %v2509_v7 = vpop.f32.mrf.mxu0 }
 0x47f   : > { %v2553_v48 = vadd.f32 %v2541_v5, %v2529_v43  ;;  %v2540_v12 = vmul.f32 %v2509_v7, %v2014_v35  ;;  %v2570_v24 = vpack.c.bf16 %v2551_v59, %v2550_v4  ;;  %v2759_v60 = vpop.permute.xlu0 %2758 }
 0x481   : > { %v2552_v11 = vadd.f32 %v2540_v12, %v2528_v25  ;;  %v2764_v9 = vpop.permute.xlu1 %2763 }
 0x483   : > { %v2571_v20 = vpack.c.bf16 %v2553_v48, %v2552_v11 }
 0x485   : > { %3427 = vmatprep.subr.bf16.mxu0 %v2571_v20  ;;  %v2754_v5 = vpop.permute.xlu1 %2753 }
 0x486   : > { %3428 = vmatpush3.bf16.msra.mxu0 %v2571_v20 }
 0x487   : > { %3429 = vmatprep.subr.bf16.mxu0 %v2570_v24 }
 0x48a   : > { %3430 = vmatpush3.bf16.msra.mxu0 %v2570_v24  ;;  %v2749_v24 = vpop.permute.xlu0 %2748 }
 0x48b   : > { %3431 = vmatprep.subr.bf16.mxu0 %v2569_v6 }
 0x48e   : > { %3432 = vmatpush3.bf16.msra.mxu0 %v2569_v6 }
 0x48f   : > { %3433 = vmatprep.subr.bf16.mxu0 %v2568_v28 }
 0x492   : > { %3434 = vmatpush3.bf16.msra.mxu0 %v2568_v28 }
 0x493   : > { %3435 = vmatprep.subr.bf16.mxu0 %v2567_v44 }
 0x496   : > { %3436 = vmatpush3.bf16.msra.mxu0 %v2567_v44 }
 0x497   : > { %3437 = vmatprep.subr.bf16.mxu0 %v4681_v17 }
 0x49a   : > { %3438 = vmatpush3.bf16.msra.mxu0 %v4681_v17  ;;  %v4760_v17 = vpop.f32.mrf.mxu1 }
 0x49c   : > { %v1899_v54 = vpop.f32.mrf.mxu1 }
 0x49d   : > { %3440 = vmatmul.mubr.msk.bf16.vlgmr.msra.gmra.mxu0 %vm2602_vm15, %v3661_v37 }
 0x49e   : > { %3443 = vmatprep.mubr.msk.bf16.mxu0 %vm2602_vm15, %v3664_v49  ;;  %v4762_v33 = vpop.f32.mrf.mxu1 }
 0x4a0   : > { %v1902_v38 = vpop.f32.mrf.mxu1 }
 0x4a2   : > { %v4764_v32 = vpop.f32.mrf.mxu1 }
 0x4a4   : > { %v1907_v36 = vpop.f32.mrf.mxu1 }
 0x4a5   : > { %3444 = vmatmul.mubr.msk.bf16.gmra.mxu0 %vm2602_vm15, %v3666_v62 }
 0x4a6   : > { %3447 = vmatprep.mubr.msk.bf16.mxu0 %vm2602_vm15, %v3669_v40  ;;  %v1908_v19 = vpop.f32.mrf.mxu1 }
 0x4a8   : > { %v1910_v27 = vpop.f32.mrf.mxu1 }
 0x4aa   : > { %v1913_v29 = vpop.f32.mrf.mxu1 }
 0x4ac   : > { %v1915_v26 = vpop.f32.mrf.mxu1 }
 0x4ad   : > { %3448 = vmatmul.mubr.msk.bf16.gmra.mxu0 %vm2602_vm15, %v3671_v8  ;;  %v2744_v26 = vpop.permute.xlu1 %2743 }
 0x4ae   : > { %v1916_v21 = vpop.f32.mrf.mxu1  ;;  %3463 = vmatprep.mubr.msk.bf16.mxu0 %vm2602_vm15, %v3672_v2 }
 0x4b0   : > { %v1918_v22 = vpop.f32.mrf.mxu1 }
 0x4b2   : > { %v1921_v23 = vpop.f32.mrf.mxu1 }
 0x4b4   : > { %v1923_v44 = vpop.f32.mrf.mxu1 }
 0x4b6   : > { %v1924_v46 = vpop.f32.mrf.mxu1 }
 0x4b8   : > { %v1926_v18 = vpop.f32.mrf.mxu1 }
 0x4b9   : > { %v2739_v18 = vpop.permute.xlu0 %2738 }
 0x4ba   : > { %v1929_v47 = vpop.f32.mrf.mxu1 }
 0x4bc   : > { %v1931_v14 = vpop.f32.mrf.mxu1 }
 0x4be   : > { %v1932_v50 = vpop.f32.mrf.mxu1 }
 0x4c0   : > { %v1934_v41 = vpop.f32.mrf.mxu1 }
 0x4c2   : > { %v1937_v15 = vpop.f32.mrf.mxu1 }
 0x4c4   : > { %v1939_v63 = vpop.f32.mrf.mxu1 }
 0x4c6   : > { %v1940_v34 = vpop.f32.mrf.mxu1 }
 0x4c8   : > { %v1942_v31 = vpop.f32.mrf.mxu1 }
 0x4c9   : > { %v2734_v31 = vpop.permute.xlu1 %2733 }
 0x55d   : > { %v3441_v42 = vpop.f32.mrf.mxu0 }
 0x55f   : > { %v4770_v52 = vpop.f32.mrf.mxu0 }
 0x561   : > { %v3442_v28 = vpop.f32.mrf.mxu0 }
 0x562   : > { %v2705_v40 = vadd.f32 %v3442_v28, %v1908_v19 }
 0x563   : > { %v2658_v0 = vpop.f32.mrf.mxu0 }
 0x564   : > { %v2703_v14 = vadd.f32 %v2658_v0, %v4762_v33 }
 0x565   : > { %v3445_v10 = vpop.f32.mrf.mxu0 }
 0x566   : > { %v2708_v1 = vadd.f32 %v3445_v10, %v1921_v23 }
 0x567   : > { %v2671_v39 = vpop.f32.mrf.mxu0 }
 0x568   : > { %v2792_v11 = vadd.f32 %v2759_v60, %v2708_v1  ;;  %v2706_v20 = vadd.f32 %v2671_v39, %v1913_v29 }
 0x569   : > { %v3446_v57 = vpop.f32.mrf.mxu0 }
 0x56a   : > { %v2709_v59 = vadd.f32 %v3446_v57, %v1924_v46  ;;  %v2816_v23 = vmul.f32 0.01, %v2792_v11  ;;  %v2790_v29 = vadd.f32 %v2749_v24, %v2706_v20  ;;  %vm2804_vm14 = vcmp.gt.f32.partialorder %v2792_v11, 0.0 }
 0x56b   : > { %v2674_v16 = vpop.f32.mrf.mxu0 }
 0x56c   : > { %v2793_v45 = vadd.f32 %v2764_v9, %v2709_v59  ;;  %v2707_v35 = vadd.f32 %v2674_v16, %v1916_v21  ;;  %v2704_v21 = vadd.f32 %v3441_v42, %v4764_v32  ;;  %v2702_v32 = vadd.f32 %v4770_v52, %v4760_v17 }
 0x56d   : > { %v3449_v3 = vpop.f32.mrf.mxu0  ;;  %v2814_v63 = vmul.f32 0.01, %v2790_v29  ;;  %vm2802_vm2 = vcmp.gt.f32.partialorder %v2790_v29, 0.0 }
 0x56e   : > { %v2712_v13 = vadd.f32 %v3449_v3, %v1937_v15  ;;  %v2817_v8 = vmul.f32 0.01, %v2793_v45  ;;  %v2791_v54 = vadd.f32 %v2754_v5, %v2707_v35  ;;  %vm2805_vm13 = vcmp.gt.f32.partialorder %v2793_v45, 0.0 }
 0x56f   : > { %v2687_v61 = vpop.f32.mrf.mxu0  ;;  %v2788_v15 = vadd.f32 %v2739_v18, %v2704_v21  ;;  %v2826_v10 = vsel %vm2802_vm2, %v2790_v29, %v2814_v63 }
 0x570   : > { %v2796_v6 = vadd.f32 %v2779_v58, %v2712_v13  ;;  %v2710_v53 = vadd.f32 %v2687_v61, %v1929_v47  ;;  %v2789_v47 = vadd.f32 %v2744_v26, %v2705_v40  ;;  %v2829_v41 = vsel %vm2805_vm13, %v2793_v45, %v2817_v8  ;;  %v2729_v58 = vpop.permute.xlu0 %2728  ;;  %v3673_v13 = vld [vmem:[%s4806_s8 + $0x8] ss:$0 sps:$4 sm:$0xff]  }
 0x571   : > { %v3450_v30 = vpop.f32.mrf.mxu0  ;;  %vm2803_vm0 = vcmp.gt.f32.partialorder %v2791_v54, 0.0  ;;  %v2812_v33 = vmul.f32 0.01, %v2788_v15  ;;  %v2786_v0 = vadd.f32 %v2729_v58, %v2702_v32  ;;  %vm2800_vm3 = vcmp.gt.f32.partialorder %v2788_v15, 0.0 }
 0x572   : > { %v2794_v43 = vadd.f32 %v2769_v56, %v2710_v53  ;;  %v2713_v4 = vadd.f32 %v3450_v30, %v1940_v34  ;;  %v2820_v25 = vmul.f32 0.01, %v2796_v6  ;;  %vm2808_vm9 = vcmp.gt.f32.partialorder %v2796_v6, 0.0 }
 0x573   : > { %v2690_v7 = vpop.f32.mrf.mxu0  ;;  %v2828_v34 = vsel %vm2804_vm14, %v2792_v11, %v2816_v23  ;;  %v2813_v42 = vmul.f32 0.01, %v2789_v47  ;;  %vm2801_vm1 = vcmp.gt.f32.partialorder %v2789_v47, 0.0  ;;  %v2810_v52 = vmul.f32 0.01, %v2786_v0 }
 0x574   : > { %v2797_v48 = vadd.f32 %v2784_v51, %v2713_v4  ;;  %v2711_v12 = vadd.f32 %v2690_v7, %v1932_v50  ;;  %v2818_v37 = vmul.f32 0.01, %v2794_v43  ;;  %vm2806_vm11 = vcmp.gt.f32.partialorder %v2794_v43, 0.0  ;;  %v2849_v60 = vpop.permute.xlu0 %2848 }
 0x575   : > { %v2832_v36 = vsel %vm2808_vm9, %v2796_v6, %v2820_v25  ;;  %v2815_v50 = vmul.f32 0.01, %v2791_v54  ;;  %v2840_v2 = vpack.c.bf16 %v2829_v41, %v2828_v34  ;;  %v2787_v51 = vadd.f32 %v2734_v31, %v2703_v14 }
 0x576   : > { %vm2809_vm10 = vcmp.gt.f32.partialorder %v2797_v48, 0.0  ;;  %v2821_v49 = vmul.f32 0.01, %v2797_v48  ;;  %v2795_v62 = vadd.f32 %v2774_v55, %v2711_v12  ;;  %v2830_v44 = vsel %vm2806_vm11, %v2794_v43, %v2818_v37  ;;  %v2854_v43 = vpop.permute.xlu1 %2853 }
 0x577   : > { %v2827_v28 = vsel %vm2803_vm0, %v2791_v54, %v2815_v50  ;;  %v2811_v39 = vmul.f32 0.01, %v2787_v51  ;;  %v2825_v17 = vsel %vm2801_vm1, %v2789_v47, %v2813_v42  ;;  %vm2799_vm4 = vcmp.gt.f32.partialorder %v2787_v51, 0.0 }
 0x578   : > { %vm2807_vm12 = vcmp.gt.f32.partialorder %v2795_v62, 0.0  ;;  %v2819_v38 = vmul.f32 0.01, %v2795_v62  ;;  %v2833_v27 = vsel %vm2809_vm10, %v2797_v48, %v2821_v49  ;;  %v2839_v55 = vpack.c.bf16 %v2827_v28, %v2826_v10  ;;  %v2859_v59 = vpop.permute.xlu0 %2858 }
 0x579   : > { %v2842_v22 = vpack.c.bf16 %v2833_v27, %v2832_v36  ;;  %v2824_v56 = vsel %vm2800_vm3, %v2788_v15, %v2812_v33  ;;  %vm2798_vm5 = vcmp.gt.f32.partialorder %v2786_v0, 0.0  ;;  %v2823_v16 = vsel %vm2799_vm4, %v2787_v51, %v2811_v39 }
 0x57a   : > { %v2831_v46 = vsel %vm2807_vm12, %v2795_v62, %v2819_v38  ;;  %v2838_v57 = vpack.c.bf16 %v2825_v17, %v2824_v56  ;;  %v2822_v9 = vsel %vm2798_vm5, %v2786_v0, %v2810_v52 }
 0x57b   : > { %3451 = vmatprep.subr.bf16.mxu0 %v2842_v22  ;;  %v2841_v19 = vpack.c.bf16 %v2831_v46, %v2830_v44  ;;  %v2837_v3 = vpack.c.bf16 %v2823_v16, %v2822_v9 }
 0x57c   : > { %3452 = vmatpush3.bf16.msra.mxu0 %v2842_v22 }
 0x57d   : > { %3453 = vmatprep.subr.bf16.mxu0 %v2841_v19 }
 0x580   : > { %3454 = vmatpush3.bf16.msra.mxu0 %v2841_v19 }
 0x581   : > { %3455 = vmatprep.subr.bf16.mxu0 %v2840_v2 }
 0x584   : > { %3456 = vmatpush3.bf16.msra.mxu0 %v2840_v2 }
 0x585   : > { %3457 = vmatprep.subr.bf16.mxu0 %v2839_v55 }
 0x588   : > { %3458 = vmatpush3.bf16.msra.mxu0 %v2839_v55 }
 0x589   : > { %3459 = vmatprep.subr.bf16.mxu0 %v2838_v57 }
 0x58c   : > { %3460 = vmatpush3.bf16.msra.mxu0 %v2838_v57 }
 0x58d   : > { %3461 = vmatprep.subr.bf16.mxu0 %v2837_v3 }
 0x590   : > { %3462 = vmatpush3.bf16.msra.mxu0 %v2837_v3 }
 0x593   : > { %3464 = vmatmul.mubr.msk.bf16.vlgmr.msra.gmra.mxu0 %vm2602_vm15, %v3673_v13 }
 0x653   : > { %v3465_v61 = vpop.f32.mrf.mxu0 }
 0x654   : > { %v2918_v6 = vadd.f32 %v3465_v61, %v2859_v59 }
 0x655   : > { %v2909_v53 = vpop.f32.mrf.mxu0 }
 0x656   : > { %3274 = vst [vmem:[%s456_s28 + $0x10] sm:$0xff] %v2918_v6  ;;  %v2910_v1 = vadd.f32 %v2909_v53, %v2849_v60 }
 0x657   : > { %v3466_v30 = vpop.f32.mrf.mxu0 }
 0x658   : > { %2923 = vst [vmem:[%s456_s28] sm:$0xff] %v2910_v1  ;;  %2938 = sbr.rel (!%p3809_p5) target bundleno = 1637 (0x665), region = 105 }
 0x659   : > { %v2912_v4 = vpop.f32.mrf.mxu0 }
 0x65a   : > { %v2913_v5 = vadd.f32 %v2912_v4, %v2854_v43 }
 0x65c   : > { %3273 = vst [vmem:[%s456_s28 + $0x8] sm:$0xff] %v2913_v5 }
 0x65d   : > { %v2977_v7 = vld [vmem:[%s456_s28 + $0x10] sm:$0xff] }
 0x65e   : > { %2978 = vst [vmem:[%s2940_s23 + $0x20] sm:$0xff] %v2977_v7 }
 0x65f   : > { %v2973_v45 = vld [vmem:[%s456_s28] sm:$0xff] }
 0x660   : > { %2974 = vst [vmem:[%s2940_s23] sm:$0xff] %v2973_v45 }
 0x663   : > { %v2975_v35 = vld [vmem:[%s456_s28 + $0x8] sm:$0xff] }
 0x664   : > { %2976 = vst [vmem:[%s2940_s23 + $0x10] sm:$0xff] %v2975_v35 }
 0x665 PF: > { %p19_p11 = scmp.ge.s32.totalorder %s3797_s21, 4   ;;  %s4811_s17 = smov %s3710_s18 }
 0x666   : > { %s4812_s18 = smov %s3807_s24  ;;  %s4813_s19 = smov %s3797_s21 }
 0x667   :  { %21 = sbr.rel (!%p19_p11) target bundleno = 2 (0x2), region = 188 }

</bundles_post_ra>
